<compile_context>
chip_gen: v7x
topology: tpu7x:2x2x1
jax: 0.10.0
libtpu: 0.0.40
codegen_flags: <defaults>
</compile_context>

<pallas_src>
import jax
import jax.numpy as jnp
from jax.experimental import pallas as pl
from jax.experimental.pallas import tpu as pltpu


def _lstm_kernel(x_ref, wih0_ref, whh0_ref, b0_ref,
                 w1ih_ref, w1hh_ref, b1_ref, wfc_ref, bfc_ref,
                 out_ref, xg_ref):
    H = whh0_ref.shape[0]            # hidden size
    Bp = out_ref.shape[0]            # padded batch (multiple of 8)
    TB = x_ref.shape[0]              # T * Bp (time-major then batch)
    T = TB // Bp
    mm_dt = whh0_ref.dtype           # matmul operand dtype (bf16)

    # ---- hoisted, non-recurrent layer-0 input path: one big MXU matmul ------
    # Written to a VMEM scratch so it does not live in vregs across the loop.
    xg_ref[...] = jnp.dot(x_ref[...], wih0_ref[...],
                          preferred_element_type=jnp.float32) + b0_ref[...]

    # ---- hoisted bias broadcast for layer 1 (JAX does not CSE broadcasts) ---
    b1b = jnp.broadcast_to(b1_ref[...], (Bp, 4 * H))

    def activate(gates, c):
        # Gate order after the wrapper's column permutation: i, f, o, g.
        # -> single sigmoid over the contiguous 3H block, single tanh over H.
        sig = jax.nn.sigmoid(gates[:, :3 * H])
        g_g = jnp.tanh(gates[:, 3 * H:])
        i_g = sig[:, :H]
        f_g = sig[:, H:2 * H]
        o_g = sig[:, 2 * H:]
        c_new = f_g * c + i_g * g_g
        h_new = o_g * jnp.tanh(c_new)
        return h_new, c_new

    def xg_at(t):
        start = pl.multiple_of(t * Bp, 8)
        return xg_ref[pl.ds(start, Bp), :]

    def cell0(t, h1, c1):
        g0 = xg_at(t) + jnp.dot(h1.astype(mm_dt), whh0_ref[...],
                                preferred_element_type=jnp.float32)
        return activate(g0, c1)

    def cell1(h1, h2, c2):
        # Split matmuls (no per-step concat); the h2 push is independent of h1.
        g1 = (jnp.dot(h1.astype(mm_dt), w1ih_ref[...],
                      preferred_element_type=jnp.float32)
              + jnp.dot(h2.astype(mm_dt), w1hh_ref[...],
                        preferred_element_type=jnp.float32)
              + b1b)
        return activate(g1, c2)

    z = jnp.zeros((Bp, H), jnp.float32)

    # ---- skewed (software-pipelined) recurrence ------------------------------
    # Prologue: layer 0 at t=0.  h1(-1)=c1(-1)=0, so the recurrent matmul is
    # exactly zero and can be skipped.
    h1, c1 = activate(xg_ref[0:Bp, :], z)
    h2, c2 = z, z

    def step(t, carry):
        h1, c1, h2, c2 = carry
        # layer1(t-1) and layer0(t) are data-independent: both MXU matmuls and
        # both activation groups can be in flight together.
        h2n, c2n = cell1(h1, h2, c2)
        h1n, c1n = cell0(t, h1, c1)
        return (h1n, c1n, h2n, c2n)

    unroll = min(8, max(1, T - 1))
    h1, c1, h2, c2 = jax.lax.fori_loop(1, T, step, (h1, c1, h2, c2),
                                       unroll=unroll)

    # Epilogue: layer 1 at t = T-1.
    h2, _ = cell1(h1, h2, c2)

    # ---- final Linear(H, 1): VPU multiply + lane reduce (no N=1 MXU op) -----
    out_ref[...] = (jnp.sum(h2 * wfc_ref[...], axis=-1, keepdims=True)
                    + bfc_ref[...])


def _reorder_ifgo_to_ifog(w):
    """Permute last axis (4H, PyTorch gate order i,f,g,o) to i,f,o,g."""
    i, f, g, o = jnp.split(w, 4, axis=-1)
    return jnp.concatenate([i, f, o, g], axis=-1)


@jax.jit
def lstm_model_forward(x, params):
    """x: (B, T, D) float32. Returns (B, 1) float32."""
    B, T, D = x.shape
    H = params["whh0"].shape[1]            # whh0 is (4H, H)
    Bp = ((B + 7) // 8) * 8                # pad batch to sublane width
    mm_dt = jnp.bfloat16                   # MXU-native operands; state stays f32

    # time-major, batch-padded, flattened to (T*Bp, D) for the hoisted matmul
    x_p = jnp.pad(x, ((0, Bp - B), (0, 0), (0, 0)))
    x_flat = jnp.transpose(x_p, (1, 0, 2)).reshape(T * Bp, D).astype(mm_dt)

    # Gate permutation i,f,g,o -> i,f,o,g applied to weight columns AND biases
    # for BOTH layers (kernel's activate() assumes this order).
    perm = _reorder_ifgo_to_ifog
    wih0 = perm(params["wih0"].T).astype(mm_dt)                   # (D, 4H)
    whh0 = perm(params["whh0"].T).astype(mm_dt)                   # (H, 4H)
    b0 = perm((params["bih0"] + params["bhh0"])[None, :])         # (1, 4H) f32
    w1ih = perm(params["wih1"].T).astype(mm_dt)                   # (H, 4H)
    w1hh = perm(params["whh1"].T).astype(mm_dt)                   # (H, 4H)
    b1 = perm((params["bih1"] + params["bhh1"])[None, :])         # (1, 4H) f32
    wfc = params["wfc"]                                           # (1, H) f32
    bfc = params["bfc"][None, :]                                  # (1, 1) f32

    # Explicit scoped-VMEM budget (everything is sequence-resident); rough
    # layout-padded footprint x2 headroom, clamped to [32 MiB, 128 MiB].
    def _pad(n, m):
        return ((n + m - 1) // m) * m
    lane = 128
    footprint = (
        T * Bp * _pad(D, lane) * 2                                  # x_flat bf16
        + T * Bp * _pad(4 * H, lane) * 4                            # xg scratch f32
        + (_pad(D, lane) + 3 * _pad(H, lane)) * _pad(4 * H, lane) * 2  # weights bf16
        + 4 * 8 * _pad(4 * H, lane) * 4                             # biases / fc f32
        + Bp * lane * 4)                                            # output
    vmem_limit = int(min(128 * 1024 * 1024,
                         max(32 * 1024 * 1024, 2 * footprint)))

    vmem = pl.BlockSpec(memory_space=pltpu.MemorySpace.VMEM)
    out_p = pl.pallas_call(
        _lstm_kernel,
        out_shape=jax.ShapeDtypeStruct((Bp, 1), jnp.float32),
        in_specs=[vmem] * 9,
        out_specs=vmem,
        scratch_shapes=[pltpu.VMEM((T * Bp, 4 * H), jnp.float32)],
        compiler_params=pltpu.CompilerParams(vmem_limit_bytes=vmem_limit),
    )(x_flat, wih0, whh0, b0, w1ih, w1hh, b1, wfc, bfc)

    return out_p[:B]


def init_params(key, input_size, hidden_size):
    """Deterministic synthetic params, PyTorch LSTM shapes (gate order i,f,g,o)."""
    H = hidden_size
    ks = jax.random.split(key, 10)
    u = lambda k, shape: jax.random.uniform(
        k, shape, jnp.float32, minval=-1.0 / jnp.sqrt(H), maxval=1.0 / jnp.sqrt(H))
    return {
        "wih0": u(ks[0], (4 * H, input_size)),
        "whh0": u(ks[1], (4 * H, H)),
        "bih0": u(ks[2], (4 * H,)),
        "bhh0": u(ks[3], (4 * H,)),
        "wih1": u(ks[4], (4 * H, H)),
        "whh1": u(ks[5], (4 * H, H)),
        "bih1": u(ks[6], (4 * H,)),
        "bhh1": u(ks[7], (4 * H,)),
        "wfc":  u(ks[8], (1, H)),
        "bfc":  u(ks[9], (1,)),
    }


def lstm_model_reference(x, params):
    """Pure-JAX f32 reference of the PyTorch forward (for correctness check)."""
    B, T, D = x.shape
    H = params["whh0"].shape[1]

    def cell(x_t, h, c, wih, whh, bih, bhh):
        gates = x_t @ wih.T + h @ whh.T + bih + bhh
        i = jax.nn.sigmoid(gates[:, 0:H])
        f = jax.nn.sigmoid(gates[:, H:2 * H])
        g = jnp.tanh(gates[:, 2 * H:3 * H])
        o = jax.nn.sigmoid(gates[:, 3 * H:4 * H])
        c_new = f * c + i * g
        h_new = o * jnp.tanh(c_new)
        return h_new, c_new

    h1 = c1 = h2 = c2 = jnp.zeros((B, H), jnp.float32)
    for t in range(T):
        x_t = x[:, t, :]
        h1, c1 = cell(x_t, h1, c1, params["wih0"], params["whh0"],
                      params["bih0"], params["bhh0"])
        h2, c2 = cell(h1, h2, c2, params["wih1"], params["whh1"],
                      params["bih1"], params["bhh1"])
    return h2 @ params["wfc"].T + params["bfc"]


if __name__ == "__main__":
    B, T, D, H = 2, 8, 16, 64  # batch, seq_len, input_size, hidden_size

    key = jax.random.PRNGKey(0)
    kx, kp = jax.random.split(key)
    x = jax.random.normal(kx, (B, T, D), dtype=jnp.float32)
    params = init_params(kp, D, H)

    out = lstm_model_forward(x, params)
    out = jax.block_until_ready(out)

    ref = lstm_model_reference(x, params)
    assert out.shape == (B, 1), out.shape
    # bf16 MXU operands (f32 accumulation/state) -> slightly looser tolerance.
    assert jnp.allclose(out, ref, atol=3e-2, rtol=3e-2), (out, ref)

    print("KERNEL_OK")
</pallas_src>

<mosaic_0001>
module attributes {stable_mosaic.version = 11 : i64} {
  func.func @_lstm_kernel(%arg0: memref<64x16xbf16, #tpu.memory_space<vmem>>, %arg1: memref<16x256xbf16, #tpu.memory_space<vmem>>, %arg2: memref<64x256xbf16, #tpu.memory_space<vmem>>, %arg3: memref<1x256xf32, #tpu.memory_space<vmem>>, %arg4: memref<64x256xbf16, #tpu.memory_space<vmem>>, %arg5: memref<64x256xbf16, #tpu.memory_space<vmem>>, %arg6: memref<1x256xf32, #tpu.memory_space<vmem>>, %arg7: memref<1x64xf32, #tpu.memory_space<vmem>>, %arg8: memref<1x1xf32, #tpu.memory_space<vmem>>, %arg9: memref<8x1xf32, #tpu.memory_space<vmem>>, %arg10: memref<64x256xf32, #tpu.memory_space<vmem>>) attributes {dimension_semantics = [], scalar_prefetch = 0 : i64, scratch_operands = 1 : i64, tpu.core_type = #tpu.core_type<tc>} {
    %c0 = arith.constant 0 : index
    %c0_0 = arith.constant 0 : index
    %0 = vector.load %arg0[%c0, %c0_0] : memref<64x16xbf16, #tpu.memory_space<vmem>>, vector<64x16xbf16>
    %c0_1 = arith.constant 0 : index
    %c0_2 = arith.constant 0 : index
    %1 = vector.load %arg1[%c0_1, %c0_2] : memref<16x256xbf16, #tpu.memory_space<vmem>>, vector<16x256xbf16>
    %cst = arith.constant dense<0.000000e+00> : vector<64x256xf32>
    %2 = tpu.matmul %0, %1, %cst {dimension_numbers = #tpu.dot_dimension_numbers<[1], [0], [0], [1], [0, 0, 1, 1], [], []>} : vector<64x16xbf16>, vector<16x256xbf16>, vector<64x256xf32> -> vector<64x256xf32>
    %c0_3 = arith.constant 0 : index
    %c0_4 = arith.constant 0 : index
    %3 = vector.load %arg3[%c0_3, %c0_4] : memref<1x256xf32, #tpu.memory_space<vmem>>, vector<1x256xf32>
    %4 = vector.broadcast %3 : vector<1x256xf32> to vector<64x256xf32>
    %5 = arith.addf %2, %4 : vector<64x256xf32>
    %c0_5 = arith.constant 0 : index
    %c0_6 = arith.constant 0 : index
    %6 = vector.load %arg10[%c0_5, %c0_6] : memref<64x256xf32, #tpu.memory_space<vmem>>, vector<64x256xf32>
    tpu.vector_store %arg10[%c0_5, %c0_6], %5 {strides = array<i32>} : memref<64x256xf32, #tpu.memory_space<vmem>>, vector<64x256xf32>,
    %c0_7 = arith.constant 0 : index
    %c0_8 = arith.constant 0 : index
    %7 = vector.load %arg6[%c0_7, %c0_8] : memref<1x256xf32, #tpu.memory_space<vmem>>, vector<1x256xf32>
    %8 = vector.shape_cast %7 : vector<1x256xf32> to vector<1x256xf32>
    %9 = vector.broadcast %8 : vector<1x256xf32> to vector<8x256xf32>
    %cst_9 = arith.constant 0.000000e+00 : f32
    %10 = vector.broadcast %cst_9 : f32 to vector<8x64xf32>
    %c0_10 = arith.constant 0 : index
    %c0_11 = arith.constant 0 : index
    %11 = vector.load %arg10[%c0_10, %c0_11] : memref<64x256xf32, #tpu.memory_space<vmem>>, vector<8x256xf32>
    %12 = vector.extract_strided_slice %11 {offsets = [0, 0], sizes = [8, 192], strides = [1, 1]} : vector<8x256xf32> to vector<8x192xf32>
    %13 = arith.negf %12 : vector<8x192xf32>
    %14 = math.exp %13 : vector<8x192xf32>
    %cst_12 = arith.constant 1.000000e+00 : f32
    %15 = vector.broadcast %cst_12 : f32 to vector<8x192xf32>
    %16 = arith.addf %15, %14 : vector<8x192xf32>
    %17 = arith.divf %15, %16 : vector<8x192xf32>
    %18 = vector.extract_strided_slice %11 {offsets = [0, 192], sizes = [8, 64], strides = [1, 1]} : vector<8x256xf32> to vector<8x64xf32>
    %19 = math.tanh %18 : vector<8x64xf32>
    %20 = vector.extract_strided_slice %17 {offsets = [0, 0], sizes = [8, 64], strides = [1, 1]} : vector<8x192xf32> to vector<8x64xf32>
    %21 = vector.extract_strided_slice %17 {offsets = [0, 64], sizes = [8, 64], strides = [1, 1]} : vector<8x192xf32> to vector<8x64xf32>
    %22 = vector.extract_strided_slice %17 {offsets = [0, 128], sizes = [8, 64], strides = [1, 1]} : vector<8x192xf32> to vector<8x64xf32>
    %23 = arith.mulf %21, %10 : vector<8x64xf32>
    %24 = arith.mulf %20, %19 : vector<8x64xf32>
    %25 = arith.addf %23, %24 : vector<8x64xf32>
    %26 = math.tanh %25 : vector<8x64xf32>
    %27 = arith.mulf %22, %26 : vector<8x64xf32>
    %c1_i32 = arith.constant 1 : i32
    %28 = arith.truncf %27 : vector<8x64xf32> to vector<8x64xbf16>
    %c0_13 = arith.constant 0 : index
    %c0_14 = arith.constant 0 : index
    %29 = vector.load %arg4[%c0_13, %c0_14] : memref<64x256xbf16, #tpu.memory_space<vmem>>, vector<64x256xbf16>
    %cst_15 = arith.constant dense<0.000000e+00> : vector<8x256xf32>
    %30 = tpu.matmul %28, %29, %cst_15 {dimension_numbers = #tpu.dot_dimension_numbers<[1], [0], [0], [1], [0, 0, 1, 1], [], []>} : vector<8x64xbf16>, vector<64x256xbf16>, vector<8x256xf32> -> vector<8x256xf32>
    %31 = arith.truncf %10 : vector<8x64xf32> to vector<8x64xbf16>
    %c0_16 = arith.constant 0 : index
    %c0_17 = arith.constant 0 : index
    %32 = vector.load %arg5[%c0_16, %c0_17] : memref<64x256xbf16, #tpu.memory_space<vmem>>, vector<64x256xbf16>
    %cst_18 = arith.constant dense<0.000000e+00> : vector<8x256xf32>
    %33 = tpu.matmul %31, %32, %cst_18 {dimension_numbers = #tpu.dot_dimension_numbers<[1], [0], [0], [1], [0, 0, 1, 1], [], []>} : vector<8x64xbf16>, vector<64x256xbf16>, vector<8x256xf32> -> vector<8x256xf32>
    %34 = arith.addf %30, %33 : vector<8x256xf32>
    %35 = arith.addf %34, %9 : vector<8x256xf32>
    %36 = vector.extract_strided_slice %35 {offsets = [0, 0], sizes = [8, 192], strides = [1, 1]} : vector<8x256xf32> to vector<8x192xf32>
    %37 = arith.negf %36 : vector<8x192xf32>
    %38 = math.exp %37 : vector<8x192xf32>
    %cst_19 = arith.constant 1.000000e+00 : f32
    %39 = vector.broadcast %cst_19 : f32 to vector<8x192xf32>
    %40 = arith.addf %39, %38 : vector<8x192xf32>
    %41 = arith.divf %39, %40 : vector<8x192xf32>
    %42 = vector.extract_strided_slice %35 {offsets = [0, 192], sizes = [8, 64], strides = [1, 1]} : vector<8x256xf32> to vector<8x64xf32>
    %43 = math.tanh %42 : vector<8x64xf32>
    %44 = vector.extract_strided_slice %41 {offsets = [0, 0], sizes = [8, 64], strides = [1, 1]} : vector<8x192xf32> to vector<8x64xf32>
    %45 = vector.extract_strided_slice %41 {offsets = [0, 64], sizes = [8, 64], strides = [1, 1]} : vector<8x192xf32> to vector<8x64xf32>
    %46 = vector.extract_strided_slice %41 {offsets = [0, 128], sizes = [8, 64], strides = [1, 1]} : vector<8x192xf32> to vector<8x64xf32>
    %47 = arith.mulf %45, %10 : vector<8x64xf32>
    %48 = arith.mulf %44, %43 : vector<8x64xf32>
    %49 = arith.addf %47, %48 : vector<8x64xf32>
    %50 = math.tanh %49 : vector<8x64xf32>
    %51 = arith.mulf %46, %50 : vector<8x64xf32>
    %c8_i32 = arith.constant 8 : i32
    %52 = arith.muli %c1_i32, %c8_i32 : i32
    %53 = tpu.assume_multiple %52, 8 : i32
    %54 = arith.index_cast %53 : i32 to index
    %c0_20 = arith.constant 0 : index
    %55 = vector.load %arg10[%54, %c0_20] : memref<64x256xf32, #tpu.memory_space<vmem>>, vector<8x256xf32>
    %56 = arith.truncf %27 : vector<8x64xf32> to vector<8x64xbf16>
    %c0_21 = arith.constant 0 : index
    %c0_22 = arith.constant 0 : index
    %57 = vector.load %arg2[%c0_21, %c0_22] : memref<64x256xbf16, #tpu.memory_space<vmem>>, vector<64x256xbf16>
    %cst_23 = arith.constant dense<0.000000e+00> : vector<8x256xf32>
    %58 = tpu.matmul %56, %57, %cst_23 {dimension_numbers = #tpu.dot_dimension_numbers<[1], [0], [0], [1], [0, 0, 1, 1], [], []>} : vector<8x64xbf16>, vector<64x256xbf16>, vector<8x256xf32> -> vector<8x256xf32>
    %59 = arith.addf %55, %58 : vector<8x256xf32>
    %60 = vector.extract_strided_slice %59 {offsets = [0, 0], sizes = [8, 192], strides = [1, 1]} : vector<8x256xf32> to vector<8x192xf32>
    %61 = arith.negf %60 : vector<8x192xf32>
    %62 = math.exp %61 : vector<8x192xf32>
    %cst_24 = arith.constant 1.000000e+00 : f32
    %63 = vector.broadcast %cst_24 : f32 to vector<8x192xf32>
    %64 = arith.addf %63, %62 : vector<8x192xf32>
    %65 = arith.divf %63, %64 : vector<8x192xf32>
    %66 = vector.extract_strided_slice %59 {offsets = [0, 192], sizes = [8, 64], strides = [1, 1]} : vector<8x256xf32> to vector<8x64xf32>
    %67 = math.tanh %66 : vector<8x64xf32>
    %68 = vector.extract_strided_slice %65 {offsets = [0, 0], sizes = [8, 64], strides = [1, 1]} : vector<8x192xf32> to vector<8x64xf32>
    %69 = vector.extract_strided_slice %65 {offsets = [0, 64], sizes = [8, 64], strides = [1, 1]} : vector<8x192xf32> to vector<8x64xf32>
    %70 = vector.extract_strided_slice %65 {offsets = [0, 128], sizes = [8, 64], strides = [1, 1]} : vector<8x192xf32> to vector<8x64xf32>
    %71 = arith.mulf %69, %25 : vector<8x64xf32>
    %72 = arith.mulf %68, %67 : vector<8x64xf32>
    %73 = arith.addf %71, %72 : vector<8x64xf32>
    %74 = math.tanh %73 : vector<8x64xf32>
    %75 = arith.mulf %70, %74 : vector<8x64xf32>
    %c2_i32 = arith.constant 2 : i32
    %76 = arith.truncf %75 : vector<8x64xf32> to vector<8x64xbf16>
    %c0_25 = arith.constant 0 : index
    %c0_26 = arith.constant 0 : index
    %77 = vector.load %arg4[%c0_25, %c0_26] : memref<64x256xbf16, #tpu.memory_space<vmem>>, vector<64x256xbf16>
    %cst_27 = arith.constant dense<0.000000e+00> : vector<8x256xf32>
    %78 = tpu.matmul %76, %77, %cst_27 {dimension_numbers = #tpu.dot_dimension_numbers<[1], [0], [0], [1], [0, 0, 1, 1], [], []>} : vector<8x64xbf16>, vector<64x256xbf16>, vector<8x256xf32> -> vector<8x256xf32>
    %79 = arith.truncf %51 : vector<8x64xf32> to vector<8x64xbf16>
    %c0_28 = arith.constant 0 : index
    %c0_29 = arith.constant 0 : index
    %80 = vector.load %arg5[%c0_28, %c0_29] : memref<64x256xbf16, #tpu.memory_space<vmem>>, vector<64x256xbf16>
    %cst_30 = arith.constant dense<0.000000e+00> : vector<8x256xf32>
    %81 = tpu.matmul %79, %80, %cst_30 {dimension_numbers = #tpu.dot_dimension_numbers<[1], [0], [0], [1], [0, 0, 1, 1], [], []>} : vector<8x64xbf16>, vector<64x256xbf16>, vector<8x256xf32> -> vector<8x256xf32>
    %82 = arith.addf %78, %81 : vector<8x256xf32>
    %83 = arith.addf %82, %9 : vector<8x256xf32>
    %84 = vector.extract_strided_slice %83 {offsets = [0, 0], sizes = [8, 192], strides = [1, 1]} : vector<8x256xf32> to vector<8x192xf32>
    %85 = arith.negf %84 : vector<8x192xf32>
    %86 = math.exp %85 : vector<8x192xf32>
    %cst_31 = arith.constant 1.000000e+00 : f32
    %87 = vector.broadcast %cst_31 : f32 to vector<8x192xf32>
    %88 = arith.addf %87, %86 : vector<8x192xf32>
    %89 = arith.divf %87, %88 : vector<8x192xf32>
    %90 = vector.extract_strided_slice %83 {offsets = [0, 192], sizes = [8, 64], strides = [1, 1]} : vector<8x256xf32> to vector<8x64xf32>
    %91 = math.tanh %90 : vector<8x64xf32>
    %92 = vector.extract_strided_slice %89 {offsets = [0, 0], sizes = [8, 64], strides = [1, 1]} : vector<8x192xf32> to vector<8x64xf32>
    %93 = vector.extract_strided_slice %89 {offsets = [0, 64], sizes = [8, 64], strides = [1, 1]} : vector<8x192xf32> to vector<8x64xf32>
    %94 = vector.extract_strided_slice %89 {offsets = [0, 128], sizes = [8, 64], strides = [1, 1]} : vector<8x192xf32> to vector<8x64xf32>
    %95 = arith.mulf %93, %49 : vector<8x64xf32>
    %96 = arith.mulf %92, %91 : vector<8x64xf32>
    %97 = arith.addf %95, %96 : vector<8x64xf32>
    %98 = math.tanh %97 : vector<8x64xf32>
    %99 = arith.mulf %94, %98 : vector<8x64xf32>
    %c8_i32_32 = arith.constant 8 : i32
    %100 = arith.muli %c2_i32, %c8_i32_32 : i32
    %101 = tpu.assume_multiple %100, 8 : i32
    %102 = arith.index_cast %101 : i32 to index
    %c0_33 = arith.constant 0 : index
    %103 = vector.load %arg10[%102, %c0_33] : memref<64x256xf32, #tpu.memory_space<vmem>>, vector<8x256xf32>
    %104 = arith.truncf %75 : vector<8x64xf32> to vector<8x64xbf16>
    %c0_34 = arith.constant 0 : index
    %c0_35 = arith.constant 0 : index
    %105 = vector.load %arg2[%c0_34, %c0_35] : memref<64x256xbf16, #tpu.memory_space<vmem>>, vector<64x256xbf16>
    %cst_36 = arith.constant dense<0.000000e+00> : vector<8x256xf32>
    %106 = tpu.matmul %104, %105, %cst_36 {dimension_numbers = #tpu.dot_dimension_numbers<[1], [0], [0], [1], [0, 0, 1, 1], [], []>} : vector<8x64xbf16>, vector<64x256xbf16>, vector<8x256xf32> -> vector<8x256xf32>
    %107 = arith.addf %103, %106 : vector<8x256xf32>
    %108 = vector.extract_strided_slice %107 {offsets = [0, 0], sizes = [8, 192], strides = [1, 1]} : vector<8x256xf32> to vector<8x192xf32>
    %109 = arith.negf %108 : vector<8x192xf32>
    %110 = math.exp %109 : vector<8x192xf32>
    %cst_37 = arith.constant 1.000000e+00 : f32
    %111 = vector.broadcast %cst_37 : f32 to vector<8x192xf32>
    %112 = arith.addf %111, %110 : vector<8x192xf32>
    %113 = arith.divf %111, %112 : vector<8x192xf32>
    %114 = vector.extract_strided_slice %107 {offsets = [0, 192], sizes = [8, 64], strides = [1, 1]} : vector<8x256xf32> to vector<8x64xf32>
    %115 = math.tanh %114 : vector<8x64xf32>
    %116 = vector.extract_strided_slice %113 {offsets = [0, 0], sizes = [8, 64], strides = [1, 1]} : vector<8x192xf32> to vector<8x64xf32>
    %117 = vector.extract_strided_slice %113 {offsets = [0, 64], sizes = [8, 64], strides = [1, 1]} : vector<8x192xf32> to vector<8x64xf32>
    %118 = vector.extract_strided_slice %113 {offsets = [0, 128], sizes = [8, 64], strides = [1, 1]} : vector<8x192xf32> to vector<8x64xf32>
    %119 = arith.mulf %117, %73 : vector<8x64xf32>
    %120 = arith.mulf %116, %115 : vector<8x64xf32>
    %121 = arith.addf %119, %120 : vector<8x64xf32>
    %122 = math.tanh %121 : vector<8x64xf32>
    %123 = arith.mulf %118, %122 : vector<8x64xf32>
    %c3_i32 = arith.constant 3 : i32
    %124 = arith.truncf %123 : vector<8x64xf32> to vector<8x64xbf16>
    %c0_38 = arith.constant 0 : index
    %c0_39 = arith.constant 0 : index
    %125 = vector.load %arg4[%c0_38, %c0_39] : memref<64x256xbf16, #tpu.memory_space<vmem>>, vector<64x256xbf16>
    %cst_40 = arith.constant dense<0.000000e+00> : vector<8x256xf32>
    %126 = tpu.matmul %124, %125, %cst_40 {dimension_numbers = #tpu.dot_dimension_numbers<[1], [0], [0], [1], [0, 0, 1, 1], [], []>} : vector<8x64xbf16>, vector<64x256xbf16>, vector<8x256xf32> -> vector<8x256xf32>
    %127 = arith.truncf %99 : vector<8x64xf32> to vector<8x64xbf16>
    %c0_41 = arith.constant 0 : index
    %c0_42 = arith.constant 0 : index
    %128 = vector.load %arg5[%c0_41, %c0_42] : memref<64x256xbf16, #tpu.memory_space<vmem>>, vector<64x256xbf16>
    %cst_43 = arith.constant dense<0.000000e+00> : vector<8x256xf32>
    %129 = tpu.matmul %127, %128, %cst_43 {dimension_numbers = #tpu.dot_dimension_numbers<[1], [0], [0], [1], [0, 0, 1, 1], [], []>} : vector<8x64xbf16>, vector<64x256xbf16>, vector<8x256xf32> -> vector<8x256xf32>
    %130 = arith.addf %126, %129 : vector<8x256xf32>
    %131 = arith.addf %130, %9 : vector<8x256xf32>
    %132 = vector.extract_strided_slice %131 {offsets = [0, 0], sizes = [8, 192], strides = [1, 1]} : vector<8x256xf32> to vector<8x192xf32>
    %133 = arith.negf %132 : vector<8x192xf32>
    %134 = math.exp %133 : vector<8x192xf32>
    %cst_44 = arith.constant 1.000000e+00 : f32
    %135 = vector.broadcast %cst_44 : f32 to vector<8x192xf32>
    %136 = arith.addf %135, %134 : vector<8x192xf32>
    %137 = arith.divf %135, %136 : vector<8x192xf32>
    %138 = vector.extract_strided_slice %131 {offsets = [0, 192], sizes = [8, 64], strides = [1, 1]} : vector<8x256xf32> to vector<8x64xf32>
    %139 = math.tanh %138 : vector<8x64xf32>
    %140 = vector.extract_strided_slice %137 {offsets = [0, 0], sizes = [8, 64], strides = [1, 1]} : vector<8x192xf32> to vector<8x64xf32>
    %141 = vector.extract_strided_slice %137 {offsets = [0, 64], sizes = [8, 64], strides = [1, 1]} : vector<8x192xf32> to vector<8x64xf32>
    %142 = vector.extract_strided_slice %137 {offsets = [0, 128], sizes = [8, 64], strides = [1, 1]} : vector<8x192xf32> to vector<8x64xf32>
    %143 = arith.mulf %141, %97 : vector<8x64xf32>
    %144 = arith.mulf %140, %139 : vector<8x64xf32>
    %145 = arith.addf %143, %144 : vector<8x64xf32>
    %146 = math.tanh %145 : vector<8x64xf32>
    %147 = arith.mulf %142, %146 : vector<8x64xf32>
    %c8_i32_45 = arith.constant 8 : i32
    %148 = arith.muli %c3_i32, %c8_i32_45 : i32
    %149 = tpu.assume_multiple %148, 8 : i32
    %150 = arith.index_cast %149 : i32 to index
    %c0_46 = arith.constant 0 : index
    %151 = vector.load %arg10[%150, %c0_46] : memref<64x256xf32, #tpu.memory_space<vmem>>, vector<8x256xf32>
    %152 = arith.truncf %123 : vector<8x64xf32> to vector<8x64xbf16>
    %c0_47 = arith.constant 0 : index
    %c0_48 = arith.constant 0 : index
    %153 = vector.load %arg2[%c0_47, %c0_48] : memref<64x256xbf16, #tpu.memory_space<vmem>>, vector<64x256xbf16>
    %cst_49 = arith.constant dense<0.000000e+00> : vector<8x256xf32>
    %154 = tpu.matmul %152, %153, %cst_49 {dimension_numbers = #tpu.dot_dimension_numbers<[1], [0], [0], [1], [0, 0, 1, 1], [], []>} : vector<8x64xbf16>, vector<64x256xbf16>, vector<8x256xf32> -> vector<8x256xf32>
    %155 = arith.addf %151, %154 : vector<8x256xf32>
    %156 = vector.extract_strided_slice %155 {offsets = [0, 0], sizes = [8, 192], strides = [1, 1]} : vector<8x256xf32> to vector<8x192xf32>
    %157 = arith.negf %156 : vector<8x192xf32>
    %158 = math.exp %157 : vector<8x192xf32>
    %cst_50 = arith.constant 1.000000e+00 : f32
    %159 = vector.broadcast %cst_50 : f32 to vector<8x192xf32>
    %160 = arith.addf %159, %158 : vector<8x192xf32>
    %161 = arith.divf %159, %160 : vector<8x192xf32>
    %162 = vector.extract_strided_slice %155 {offsets = [0, 192], sizes = [8, 64], strides = [1, 1]} : vector<8x256xf32> to vector<8x64xf32>
    %163 = math.tanh %162 : vector<8x64xf32>
    %164 = vector.extract_strided_slice %161 {offsets = [0, 0], sizes = [8, 64], strides = [1, 1]} : vector<8x192xf32> to vector<8x64xf32>
    %165 = vector.extract_strided_slice %161 {offsets = [0, 64], sizes = [8, 64], strides = [1, 1]} : vector<8x192xf32> to vector<8x64xf32>
    %166 = vector.extract_strided_slice %161 {offsets = [0, 128], sizes = [8, 64], strides = [1, 1]} : vector<8x192xf32> to vector<8x64xf32>
    %167 = arith.mulf %165, %121 : vector<8x64xf32>
    %168 = arith.mulf %164, %163 : vector<8x64xf32>
    %169 = arith.addf %167, %168 : vector<8x64xf32>
    %170 = math.tanh %169 : vector<8x64xf32>
    %171 = arith.mulf %166, %170 : vector<8x64xf32>
    %c4_i32 = arith.constant 4 : i32
    %172 = arith.truncf %171 : vector<8x64xf32> to vector<8x64xbf16>
    %c0_51 = arith.constant 0 : index
    %c0_52 = arith.constant 0 : index
    %173 = vector.load %arg4[%c0_51, %c0_52] : memref<64x256xbf16, #tpu.memory_space<vmem>>, vector<64x256xbf16>
    %cst_53 = arith.constant dense<0.000000e+00> : vector<8x256xf32>
    %174 = tpu.matmul %172, %173, %cst_53 {dimension_numbers = #tpu.dot_dimension_numbers<[1], [0], [0], [1], [0, 0, 1, 1], [], []>} : vector<8x64xbf16>, vector<64x256xbf16>, vector<8x256xf32> -> vector<8x256xf32>
    %175 = arith.truncf %147 : vector<8x64xf32> to vector<8x64xbf16>
    %c0_54 = arith.constant 0 : index
    %c0_55 = arith.constant 0 : index
    %176 = vector.load %arg5[%c0_54, %c0_55] : memref<64x256xbf16, #tpu.memory_space<vmem>>, vector<64x256xbf16>
    %cst_56 = arith.constant dense<0.000000e+00> : vector<8x256xf32>
    %177 = tpu.matmul %175, %176, %cst_56 {dimension_numbers = #tpu.dot_dimension_numbers<[1], [0], [0], [1], [0, 0, 1, 1], [], []>} : vector<8x64xbf16>, vector<64x256xbf16>, vector<8x256xf32> -> vector<8x256xf32>
    %178 = arith.addf %174, %177 : vector<8x256xf32>
    %179 = arith.addf %178, %9 : vector<8x256xf32>
    %180 = vector.extract_strided_slice %179 {offsets = [0, 0], sizes = [8, 192], strides = [1, 1]} : vector<8x256xf32> to vector<8x192xf32>
    %181 = arith.negf %180 : vector<8x192xf32>
    %182 = math.exp %181 : vector<8x192xf32>
    %cst_57 = arith.constant 1.000000e+00 : f32
    %183 = vector.broadcast %cst_57 : f32 to vector<8x192xf32>
    %184 = arith.addf %183, %182 : vector<8x192xf32>
    %185 = arith.divf %183, %184 : vector<8x192xf32>
    %186 = vector.extract_strided_slice %179 {offsets = [0, 192], sizes = [8, 64], strides = [1, 1]} : vector<8x256xf32> to vector<8x64xf32>
    %187 = math.tanh %186 : vector<8x64xf32>
    %188 = vector.extract_strided_slice %185 {offsets = [0, 0], sizes = [8, 64], strides = [1, 1]} : vector<8x192xf32> to vector<8x64xf32>
    %189 = vector.extract_strided_slice %185 {offsets = [0, 64], sizes = [8, 64], strides = [1, 1]} : vector<8x192xf32> to vector<8x64xf32>
    %190 = vector.extract_strided_slice %185 {offsets = [0, 128], sizes = [8, 64], strides = [1, 1]} : vector<8x192xf32> to vector<8x64xf32>
    %191 = arith.mulf %189, %145 : vector<8x64xf32>
    %192 = arith.mulf %188, %187 : vector<8x64xf32>
    %193 = arith.addf %191, %192 : vector<8x64xf32>
    %194 = math.tanh %193 : vector<8x64xf32>
    %195 = arith.mulf %190, %194 : vector<8x64xf32>
    %c8_i32_58 = arith.constant 8 : i32
    %196 = arith.muli %c4_i32, %c8_i32_58 : i32
    %197 = tpu.assume_multiple %196, 8 : i32
    %198 = arith.index_cast %197 : i32 to index
    %c0_59 = arith.constant 0 : index
    %199 = vector.load %arg10[%198, %c0_59] : memref<64x256xf32, #tpu.memory_space<vmem>>, vector<8x256xf32>
    %200 = arith.truncf %171 : vector<8x64xf32> to vector<8x64xbf16>
    %c0_60 = arith.constant 0 : index
    %c0_61 = arith.constant 0 : index
    %201 = vector.load %arg2[%c0_60, %c0_61] : memref<64x256xbf16, #tpu.memory_space<vmem>>, vector<64x256xbf16>
    %cst_62 = arith.constant dense<0.000000e+00> : vector<8x256xf32>
    %202 = tpu.matmul %200, %201, %cst_62 {dimension_numbers = #tpu.dot_dimension_numbers<[1], [0], [0], [1], [0, 0, 1, 1], [], []>} : vector<8x64xbf16>, vector<64x256xbf16>, vector<8x256xf32> -> vector<8x256xf32>
    %203 = arith.addf %199, %202 : vector<8x256xf32>
    %204 = vector.extract_strided_slice %203 {offsets = [0, 0], sizes = [8, 192], strides = [1, 1]} : vector<8x256xf32> to vector<8x192xf32>
    %205 = arith.negf %204 : vector<8x192xf32>
    %206 = math.exp %205 : vector<8x192xf32>
    %cst_63 = arith.constant 1.000000e+00 : f32
    %207 = vector.broadcast %cst_63 : f32 to vector<8x192xf32>
    %208 = arith.addf %207, %206 : vector<8x192xf32>
    %209 = arith.divf %207, %208 : vector<8x192xf32>
    %210 = vector.extract_strided_slice %203 {offsets = [0, 192], sizes = [8, 64], strides = [1, 1]} : vector<8x256xf32> to vector<8x64xf32>
    %211 = math.tanh %210 : vector<8x64xf32>
    %212 = vector.extract_strided_slice %209 {offsets = [0, 0], sizes = [8, 64], strides = [1, 1]} : vector<8x192xf32> to vector<8x64xf32>
    %213 = vector.extract_strided_slice %209 {offsets = [0, 64], sizes = [8, 64], strides = [1, 1]} : vector<8x192xf32> to vector<8x64xf32>
    %214 = vector.extract_strided_slice %209 {offsets = [0, 128], sizes = [8, 64], strides = [1, 1]} : vector<8x192xf32> to vector<8x64xf32>
    %215 = arith.mulf %213, %169 : vector<8x64xf32>
    %216 = arith.mulf %212, %211 : vector<8x64xf32>
    %217 = arith.addf %215, %216 : vector<8x64xf32>
    %218 = math.tanh %217 : vector<8x64xf32>
    %219 = arith.mulf %214, %218 : vector<8x64xf32>
    %c5_i32 = arith.constant 5 : i32
    %220 = arith.truncf %219 : vector<8x64xf32> to vector<8x64xbf16>
    %c0_64 = arith.constant 0 : index
    %c0_65 = arith.constant 0 : index
    %221 = vector.load %arg4[%c0_64, %c0_65] : memref<64x256xbf16, #tpu.memory_space<vmem>>, vector<64x256xbf16>
    %cst_66 = arith.constant dense<0.000000e+00> : vector<8x256xf32>
    %222 = tpu.matmul %220, %221, %cst_66 {dimension_numbers = #tpu.dot_dimension_numbers<[1], [0], [0], [1], [0, 0, 1, 1], [], []>} : vector<8x64xbf16>, vector<64x256xbf16>, vector<8x256xf32> -> vector<8x256xf32>
    %223 = arith.truncf %195 : vector<8x64xf32> to vector<8x64xbf16>
    %c0_67 = arith.constant 0 : index
    %c0_68 = arith.constant 0 : index
    %224 = vector.load %arg5[%c0_67, %c0_68] : memref<64x256xbf16, #tpu.memory_space<vmem>>, vector<64x256xbf16>
    %cst_69 = arith.constant dense<0.000000e+00> : vector<8x256xf32>
    %225 = tpu.matmul %223, %224, %cst_69 {dimension_numbers = #tpu.dot_dimension_numbers<[1], [0], [0], [1], [0, 0, 1, 1], [], []>} : vector<8x64xbf16>, vector<64x256xbf16>, vector<8x256xf32> -> vector<8x256xf32>
    %226 = arith.addf %222, %225 : vector<8x256xf32>
    %227 = arith.addf %226, %9 : vector<8x256xf32>
    %228 = vector.extract_strided_slice %227 {offsets = [0, 0], sizes = [8, 192], strides = [1, 1]} : vector<8x256xf32> to vector<8x192xf32>
    %229 = arith.negf %228 : vector<8x192xf32>
    %230 = math.exp %229 : vector<8x192xf32>
    %cst_70 = arith.constant 1.000000e+00 : f32
    %231 = vector.broadcast %cst_70 : f32 to vector<8x192xf32>
    %232 = arith.addf %231, %230 : vector<8x192xf32>
    %233 = arith.divf %231, %232 : vector<8x192xf32>
    %234 = vector.extract_strided_slice %227 {offsets = [0, 192], sizes = [8, 64], strides = [1, 1]} : vector<8x256xf32> to vector<8x64xf32>
    %235 = math.tanh %234 : vector<8x64xf32>
    %236 = vector.extract_strided_slice %233 {offsets = [0, 0], sizes = [8, 64], strides = [1, 1]} : vector<8x192xf32> to vector<8x64xf32>
    %237 = vector.extract_strided_slice %233 {offsets = [0, 64], sizes = [8, 64], strides = [1, 1]} : vector<8x192xf32> to vector<8x64xf32>
    %238 = vector.extract_strided_slice %233 {offsets = [0, 128], sizes = [8, 64], strides = [1, 1]} : vector<8x192xf32> to vector<8x64xf32>
    %239 = arith.mulf %237, %193 : vector<8x64xf32>
    %240 = arith.mulf %236, %235 : vector<8x64xf32>
    %241 = arith.addf %239, %240 : vector<8x64xf32>
    %242 = math.tanh %241 : vector<8x64xf32>
    %243 = arith.mulf %238, %242 : vector<8x64xf32>
    %c8_i32_71 = arith.constant 8 : i32
    %244 = arith.muli %c5_i32, %c8_i32_71 : i32
    %245 = tpu.assume_multiple %244, 8 : i32
    %246 = arith.index_cast %245 : i32 to index
    %c0_72 = arith.constant 0 : index
    %247 = vector.load %arg10[%246, %c0_72] : memref<64x256xf32, #tpu.memory_space<vmem>>, vector<8x256xf32>
    %248 = arith.truncf %219 : vector<8x64xf32> to vector<8x64xbf16>
    %c0_73 = arith.constant 0 : index
    %c0_74 = arith.constant 0 : index
    %249 = vector.load %arg2[%c0_73, %c0_74] : memref<64x256xbf16, #tpu.memory_space<vmem>>, vector<64x256xbf16>
    %cst_75 = arith.constant dense<0.000000e+00> : vector<8x256xf32>
    %250 = tpu.matmul %248, %249, %cst_75 {dimension_numbers = #tpu.dot_dimension_numbers<[1], [0], [0], [1], [0, 0, 1, 1], [], []>} : vector<8x64xbf16>, vector<64x256xbf16>, vector<8x256xf32> -> vector<8x256xf32>
    %251 = arith.addf %247, %250 : vector<8x256xf32>
    %252 = vector.extract_strided_slice %251 {offsets = [0, 0], sizes = [8, 192], strides = [1, 1]} : vector<8x256xf32> to vector<8x192xf32>
    %253 = arith.negf %252 : vector<8x192xf32>
    %254 = math.exp %253 : vector<8x192xf32>
    %cst_76 = arith.constant 1.000000e+00 : f32
    %255 = vector.broadcast %cst_76 : f32 to vector<8x192xf32>
    %256 = arith.addf %255, %254 : vector<8x192xf32>
    %257 = arith.divf %255, %256 : vector<8x192xf32>
    %258 = vector.extract_strided_slice %251 {offsets = [0, 192], sizes = [8, 64], strides = [1, 1]} : vector<8x256xf32> to vector<8x64xf32>
    %259 = math.tanh %258 : vector<8x64xf32>
    %260 = vector.extract_strided_slice %257 {offsets = [0, 0], sizes = [8, 64], strides = [1, 1]} : vector<8x192xf32> to vector<8x64xf32>
    %261 = vector.extract_strided_slice %257 {offsets = [0, 64], sizes = [8, 64], strides = [1, 1]} : vector<8x192xf32> to vector<8x64xf32>
    %262 = vector.extract_strided_slice %257 {offsets = [0, 128], sizes = [8, 64], strides = [1, 1]} : vector<8x192xf32> to vector<8x64xf32>
    %263 = arith.mulf %261, %217 : vector<8x64xf32>
    %264 = arith.mulf %260, %259 : vector<8x64xf32>
    %265 = arith.addf %263, %264 : vector<8x64xf32>
    %266 = math.tanh %265 : vector<8x64xf32>
    %267 = arith.mulf %262, %266 : vector<8x64xf32>
    %c6_i32 = arith.constant 6 : i32
    %268 = arith.truncf %267 : vector<8x64xf32> to vector<8x64xbf16>
    %c0_77 = arith.constant 0 : index
    %c0_78 = arith.constant 0 : index
    %269 = vector.load %arg4[%c0_77, %c0_78] : memref<64x256xbf16, #tpu.memory_space<vmem>>, vector<64x256xbf16>
    %cst_79 = arith.constant dense<0.000000e+00> : vector<8x256xf32>
    %270 = tpu.matmul %268, %269, %cst_79 {dimension_numbers = #tpu.dot_dimension_numbers<[1], [0], [0], [1], [0, 0, 1, 1], [], []>} : vector<8x64xbf16>, vector<64x256xbf16>, vector<8x256xf32> -> vector<8x256xf32>
    %271 = arith.truncf %243 : vector<8x64xf32> to vector<8x64xbf16>
    %c0_80 = arith.constant 0 : index
    %c0_81 = arith.constant 0 : index
    %272 = vector.load %arg5[%c0_80, %c0_81] : memref<64x256xbf16, #tpu.memory_space<vmem>>, vector<64x256xbf16>
    %cst_82 = arith.constant dense<0.000000e+00> : vector<8x256xf32>
    %273 = tpu.matmul %271, %272, %cst_82 {dimension_numbers = #tpu.dot_dimension_numbers<[1], [0], [0], [1], [0, 0, 1, 1], [], []>} : vector<8x64xbf16>, vector<64x256xbf16>, vector<8x256xf32> -> vector<8x256xf32>
    %274 = arith.addf %270, %273 : vector<8x256xf32>
    %275 = arith.addf %274, %9 : vector<8x256xf32>
    %276 = vector.extract_strided_slice %275 {offsets = [0, 0], sizes = [8, 192], strides = [1, 1]} : vector<8x256xf32> to vector<8x192xf32>
    %277 = arith.negf %276 : vector<8x192xf32>
    %278 = math.exp %277 : vector<8x192xf32>
    %cst_83 = arith.constant 1.000000e+00 : f32
    %279 = vector.broadcast %cst_83 : f32 to vector<8x192xf32>
    %280 = arith.addf %279, %278 : vector<8x192xf32>
    %281 = arith.divf %279, %280 : vector<8x192xf32>
    %282 = vector.extract_strided_slice %275 {offsets = [0, 192], sizes = [8, 64], strides = [1, 1]} : vector<8x256xf32> to vector<8x64xf32>
    %283 = math.tanh %282 : vector<8x64xf32>
    %284 = vector.extract_strided_slice %281 {offsets = [0, 0], sizes = [8, 64], strides = [1, 1]} : vector<8x192xf32> to vector<8x64xf32>
    %285 = vector.extract_strided_slice %281 {offsets = [0, 64], sizes = [8, 64], strides = [1, 1]} : vector<8x192xf32> to vector<8x64xf32>
    %286 = vector.extract_strided_slice %281 {offsets = [0, 128], sizes = [8, 64], strides = [1, 1]} : vector<8x192xf32> to vector<8x64xf32>
    %287 = arith.mulf %285, %241 : vector<8x64xf32>
    %288 = arith.mulf %284, %283 : vector<8x64xf32>
    %289 = arith.addf %287, %288 : vector<8x64xf32>
    %290 = math.tanh %289 : vector<8x64xf32>
    %291 = arith.mulf %286, %290 : vector<8x64xf32>
    %c8_i32_84 = arith.constant 8 : i32
    %292 = arith.muli %c6_i32, %c8_i32_84 : i32
    %293 = tpu.assume_multiple %292, 8 : i32
    %294 = arith.index_cast %293 : i32 to index
    %c0_85 = arith.constant 0 : index
    %295 = vector.load %arg10[%294, %c0_85] : memref<64x256xf32, #tpu.memory_space<vmem>>, vector<8x256xf32>
    %296 = arith.truncf %267 : vector<8x64xf32> to vector<8x64xbf16>
    %c0_86 = arith.constant 0 : index
    %c0_87 = arith.constant 0 : index
    %297 = vector.load %arg2[%c0_86, %c0_87] : memref<64x256xbf16, #tpu.memory_space<vmem>>, vector<64x256xbf16>
    %cst_88 = arith.constant dense<0.000000e+00> : vector<8x256xf32>
    %298 = tpu.matmul %296, %297, %cst_88 {dimension_numbers = #tpu.dot_dimension_numbers<[1], [0], [0], [1], [0, 0, 1, 1], [], []>} : vector<8x64xbf16>, vector<64x256xbf16>, vector<8x256xf32> -> vector<8x256xf32>
    %299 = arith.addf %295, %298 : vector<8x256xf32>
    %300 = vector.extract_strided_slice %299 {offsets = [0, 0], sizes = [8, 192], strides = [1, 1]} : vector<8x256xf32> to vector<8x192xf32>
    %301 = arith.negf %300 : vector<8x192xf32>
    %302 = math.exp %301 : vector<8x192xf32>
    %cst_89 = arith.constant 1.000000e+00 : f32
    %303 = vector.broadcast %cst_89 : f32 to vector<8x192xf32>
    %304 = arith.addf %303, %302 : vector<8x192xf32>
    %305 = arith.divf %303, %304 : vector<8x192xf32>
    %306 = vector.extract_strided_slice %299 {offsets = [0, 192], sizes = [8, 64], strides = [1, 1]} : vector<8x256xf32> to vector<8x64xf32>
    %307 = math.tanh %306 : vector<8x64xf32>
    %308 = vector.extract_strided_slice %305 {offsets = [0, 0], sizes = [8, 64], strides = [1, 1]} : vector<8x192xf32> to vector<8x64xf32>
    %309 = vector.extract_strided_slice %305 {offsets = [0, 64], sizes = [8, 64], strides = [1, 1]} : vector<8x192xf32> to vector<8x64xf32>
    %310 = vector.extract_strided_slice %305 {offsets = [0, 128], sizes = [8, 64], strides = [1, 1]} : vector<8x192xf32> to vector<8x64xf32>
    %311 = arith.mulf %309, %265 : vector<8x64xf32>
    %312 = arith.mulf %308, %307 : vector<8x64xf32>
    %313 = arith.addf %311, %312 : vector<8x64xf32>
    %314 = math.tanh %313 : vector<8x64xf32>
    %315 = arith.mulf %310, %314 : vector<8x64xf32>
    %c7_i32 = arith.constant 7 : i32
    %316 = arith.truncf %315 : vector<8x64xf32> to vector<8x64xbf16>
    %c0_90 = arith.constant 0 : index
    %c0_91 = arith.constant 0 : index
    %317 = vector.load %arg4[%c0_90, %c0_91] : memref<64x256xbf16, #tpu.memory_space<vmem>>, vector<64x256xbf16>
    %cst_92 = arith.constant dense<0.000000e+00> : vector<8x256xf32>
    %318 = tpu.matmul %316, %317, %cst_92 {dimension_numbers = #tpu.dot_dimension_numbers<[1], [0], [0], [1], [0, 0, 1, 1], [], []>} : vector<8x64xbf16>, vector<64x256xbf16>, vector<8x256xf32> -> vector<8x256xf32>
    %319 = arith.truncf %291 : vector<8x64xf32> to vector<8x64xbf16>
    %c0_93 = arith.constant 0 : index
    %c0_94 = arith.constant 0 : index
    %320 = vector.load %arg5[%c0_93, %c0_94] : memref<64x256xbf16, #tpu.memory_space<vmem>>, vector<64x256xbf16>
    %cst_95 = arith.constant dense<0.000000e+00> : vector<8x256xf32>
    %321 = tpu.matmul %319, %320, %cst_95 {dimension_numbers = #tpu.dot_dimension_numbers<[1], [0], [0], [1], [0, 0, 1, 1], [], []>} : vector<8x64xbf16>, vector<64x256xbf16>, vector<8x256xf32> -> vector<8x256xf32>
    %322 = arith.addf %318, %321 : vector<8x256xf32>
    %323 = arith.addf %322, %9 : vector<8x256xf32>
    %324 = vector.extract_strided_slice %323 {offsets = [0, 0], sizes = [8, 192], strides = [1, 1]} : vector<8x256xf32> to vector<8x192xf32>
    %325 = arith.negf %324 : vector<8x192xf32>
    %326 = math.exp %325 : vector<8x192xf32>
    %cst_96 = arith.constant 1.000000e+00 : f32
    %327 = vector.broadcast %cst_96 : f32 to vector<8x192xf32>
    %328 = arith.addf %327, %326 : vector<8x192xf32>
    %329 = arith.divf %327, %328 : vector<8x192xf32>
    %330 = vector.extract_strided_slice %323 {offsets = [0, 192], sizes = [8, 64], strides = [1, 1]} : vector<8x256xf32> to vector<8x64xf32>
    %331 = math.tanh %330 : vector<8x64xf32>
    %332 = vector.extract_strided_slice %329 {offsets = [0, 0], sizes = [8, 64], strides = [1, 1]} : vector<8x192xf32> to vector<8x64xf32>
    %333 = vector.extract_strided_slice %329 {offsets = [0, 64], sizes = [8, 64], strides = [1, 1]} : vector<8x192xf32> to vector<8x64xf32>
    %334 = vector.extract_strided_slice %329 {offsets = [0, 128], sizes = [8, 64], strides = [1, 1]} : vector<8x192xf32> to vector<8x64xf32>
    %335 = arith.mulf %333, %289 : vector<8x64xf32>
    %336 = arith.mulf %332, %331 : vector<8x64xf32>
    %337 = arith.addf %335, %336 : vector<8x64xf32>
    %338 = math.tanh %337 : vector<8x64xf32>
    %339 = arith.mulf %334, %338 : vector<8x64xf32>
    %c8_i32_97 = arith.constant 8 : i32
    %340 = arith.muli %c7_i32, %c8_i32_97 : i32
    %341 = tpu.assume_multiple %340, 8 : i32
    %342 = arith.index_cast %341 : i32 to index
    %c0_98 = arith.constant 0 : index
    %343 = vector.load %arg10[%342, %c0_98] : memref<64x256xf32, #tpu.memory_space<vmem>>, vector<8x256xf32>
    %344 = arith.truncf %315 : vector<8x64xf32> to vector<8x64xbf16>
    %c0_99 = arith.constant 0 : index
    %c0_100 = arith.constant 0 : index
    %345 = vector.load %arg2[%c0_99, %c0_100] : memref<64x256xbf16, #tpu.memory_space<vmem>>, vector<64x256xbf16>
    %cst_101 = arith.constant dense<0.000000e+00> : vector<8x256xf32>
    %346 = tpu.matmul %344, %345, %cst_101 {dimension_numbers = #tpu.dot_dimension_numbers<[1], [0], [0], [1], [0, 0, 1, 1], [], []>} : vector<8x64xbf16>, vector<64x256xbf16>, vector<8x256xf32> -> vector<8x256xf32>
    %347 = arith.addf %343, %346 : vector<8x256xf32>
    %348 = vector.extract_strided_slice %347 {offsets = [0, 0], sizes = [8, 192], strides = [1, 1]} : vector<8x256xf32> to vector<8x192xf32>
    %349 = arith.negf %348 : vector<8x192xf32>
    %350 = math.exp %349 : vector<8x192xf32>
    %cst_102 = arith.constant 1.000000e+00 : f32
    %351 = vector.broadcast %cst_102 : f32 to vector<8x192xf32>
    %352 = arith.addf %351, %350 : vector<8x192xf32>
    %353 = arith.divf %351, %352 : vector<8x192xf32>
    %354 = vector.extract_strided_slice %347 {offsets = [0, 192], sizes = [8, 64], strides = [1, 1]} : vector<8x256xf32> to vector<8x64xf32>
    %355 = math.tanh %354 : vector<8x64xf32>
    %356 = vector.extract_strided_slice %353 {offsets = [0, 0], sizes = [8, 64], strides = [1, 1]} : vector<8x192xf32> to vector<8x64xf32>
    %357 = vector.extract_strided_slice %353 {offsets = [0, 64], sizes = [8, 64], strides = [1, 1]} : vector<8x192xf32> to vector<8x64xf32>
    %358 = vector.extract_strided_slice %353 {offsets = [0, 128], sizes = [8, 64], strides = [1, 1]} : vector<8x192xf32> to vector<8x64xf32>
    %359 = arith.mulf %357, %313 : vector<8x64xf32>
    %360 = arith.mulf %356, %355 : vector<8x64xf32>
    %361 = arith.addf %359, %360 : vector<8x64xf32>
    %362 = math.tanh %361 : vector<8x64xf32>
    %363 = arith.mulf %358, %362 : vector<8x64xf32>
    %c7_i32_103 = arith.constant 7 : i32
    %364 = arith.truncf %363 : vector<8x64xf32> to vector<8x64xbf16>
    %c0_104 = arith.constant 0 : index
    %c0_105 = arith.constant 0 : index
    %365 = vector.load %arg4[%c0_104, %c0_105] : memref<64x256xbf16, #tpu.memory_space<vmem>>, vector<64x256xbf16>
    %cst_106 = arith.constant dense<0.000000e+00> : vector<8x256xf32>
    %366 = tpu.matmul %364, %365, %cst_106 {dimension_numbers = #tpu.dot_dimension_numbers<[1], [0], [0], [1], [0, 0, 1, 1], [], []>} : vector<8x64xbf16>, vector<64x256xbf16>, vector<8x256xf32> -> vector<8x256xf32>
    %367 = arith.truncf %339 : vector<8x64xf32> to vector<8x64xbf16>
    %c0_107 = arith.constant 0 : index
    %c0_108 = arith.constant 0 : index
    %368 = vector.load %arg5[%c0_107, %c0_108] : memref<64x256xbf16, #tpu.memory_space<vmem>>, vector<64x256xbf16>
    %cst_109 = arith.constant dense<0.000000e+00> : vector<8x256xf32>
    %369 = tpu.matmul %367, %368, %cst_109 {dimension_numbers = #tpu.dot_dimension_numbers<[1], [0], [0], [1], [0, 0, 1, 1], [], []>} : vector<8x64xbf16>, vector<64x256xbf16>, vector<8x256xf32> -> vector<8x256xf32>
    %370 = arith.addf %366, %369 : vector<8x256xf32>
    %371 = arith.addf %370, %9 : vector<8x256xf32>
    %372 = vector.extract_strided_slice %371 {offsets = [0, 0], sizes = [8, 192], strides = [1, 1]} : vector<8x256xf32> to vector<8x192xf32>
    %373 = arith.negf %372 : vector<8x192xf32>
    %374 = math.exp %373 : vector<8x192xf32>
    %cst_110 = arith.constant 1.000000e+00 : f32
    %375 = vector.broadcast %cst_110 : f32 to vector<8x192xf32>
    %376 = arith.addf %375, %374 : vector<8x192xf32>
    %377 = arith.divf %375, %376 : vector<8x192xf32>
    %378 = vector.extract_strided_slice %371 {offsets = [0, 192], sizes = [8, 64], strides = [1, 1]} : vector<8x256xf32> to vector<8x64xf32>
    %379 = math.tanh %378 : vector<8x64xf32>
    %380 = vector.extract_strided_slice %377 {offsets = [0, 0], sizes = [8, 64], strides = [1, 1]} : vector<8x192xf32> to vector<8x64xf32>
    %381 = vector.extract_strided_slice %377 {offsets = [0, 64], sizes = [8, 64], strides = [1, 1]} : vector<8x192xf32> to vector<8x64xf32>
    %382 = vector.extract_strided_slice %377 {offsets = [0, 128], sizes = [8, 64], strides = [1, 1]} : vector<8x192xf32> to vector<8x64xf32>
    %383 = arith.mulf %381, %337 : vector<8x64xf32>
    %384 = arith.mulf %380, %379 : vector<8x64xf32>
    %385 = arith.addf %383, %384 : vector<8x64xf32>
    %386 = math.tanh %385 : vector<8x64xf32>
    %387 = arith.mulf %382, %386 : vector<8x64xf32>
    %c0_111 = arith.constant 0 : index
    %c0_112 = arith.constant 0 : index
    %388 = vector.load %arg7[%c0_111, %c0_112] : memref<1x64xf32, #tpu.memory_space<vmem>>, vector<1x64xf32>
    %389 = vector.broadcast %388 : vector<1x64xf32> to vector<8x64xf32>
    %390 = arith.mulf %387, %389 : vector<8x64xf32>
    %cst_113 = arith.constant dense<0.000000e+00> : vector<8xf32>
    %391 = vector.multi_reduction <add>, %390, %cst_113 [1] : vector<8x64xf32> to vector<8xf32>
    %392 = vector.shape_cast %391 : vector<8xf32> to vector<8x1xf32>
    %c0_114 = arith.constant 0 : index
    %c0_115 = arith.constant 0 : index
    %393 = vector.load %arg8[%c0_114, %c0_115] : memref<1x1xf32, #tpu.memory_space<vmem>>, vector<1x1xf32>
    %394 = vector.broadcast %393 : vector<1x1xf32> to vector<8x1xf32>
    %395 = arith.addf %392, %394 : vector<8x1xf32>
    %c0_116 = arith.constant 0 : index
    %c0_117 = arith.constant 0 : index
    %396 = vector.load %arg9[%c0_116, %c0_117] : memref<8x1xf32, #tpu.memory_space<vmem>>, vector<8x1xf32>
    tpu.vector_store %arg9[%c0_116, %c0_117], %395 {strides = array<i32>} : memref<8x1xf32, #tpu.memory_space<vmem>>, vector<8x1xf32>,
    return
  }
}

</mosaic_0001>

<bundles_post_ra>
// kernel: lstm_model_forward.1
= control target key start
LH: loop header
LB: loop body
LE: loop exit
PB: predicated region body
PF: predicated region fallthrough
CT: control target
= control target key end

     0   :  { %v2282_v1 = vmov 0   ;;  %vm87_vm0 = vcmask 130048   ;;  %v47_v4 = vlaneseq  ;;  %vm290_vm1 = vcmask 523264   ;;  %s3044_s1 = inlined_call_operand.vmem [shape: bf16[16,256], index: 1, kind: input, shape index: {}]   ;;  %s3045_s0 = inlined_call_operand.vmem [shape: bf16[64,16], index: 0, kind: input, shape index: {}]   ;;  %s3046_s3 = inlined_call_operand.vmem [shape: f32[1,256], index: 3, kind: input, shape index: {}]   ;;  %s3047_s5 = inlined_call_operand.vmem [shape: bf16[64,256], index: 5, kind: input, shape index: {}]   ;;  %s3048_s2 = inlined_call_operand.vmem [shape: bf16[64,256], index: 2, kind: input, shape index: {}]   ;;  %s3049_s4 = inlined_call_operand.vmem [shape: bf16[64,256], index: 4, kind: input, shape index: {}]   ;;  %s3050_s6 = inlined_call_operand.vmem [shape: f32[1,256], index: 6, kind: input, shape index: {}]   ;;  %s3051_s8 = inlined_call_operand.<no memory space> [shape: f32[1,1], index: 8, kind: input, shape index: {}]   ;;  %s3052_s7 = inlined_call_operand.vmem [shape: f32[1,64], index: 7, kind: input, shape index: {}]   ;;  %s3053_s9 = inlined_call_operand.vmem [shape: f32[8,1], index: 9, kind: output, shape index: {}]  }
   0x1   :  { %v2023_v0 = vld [vmem:[%s3044_s1 + $0x4] ss:$8 sps:$4 sm:$0xff]   ;;  %132 = vmatprep.mubr.bf16.mxu0 %v2282_v1  ;;  %326 = vmatprep.mubr.bf16.mxu1 %v2282_v1  ;;  %v2025_v2 = vld [vmem:[%s3044_s1] ss:$8 sps:$4 sm:$0xff]   ;;  %s2283_s1 = smov 64   ;;  %v2046_v32 = vld [vmem:[%s3045_s0 + $0x10] sm:$0xff]  }
   0x2   :  { %100 = vmatprep.subr.bf16.mxu0 %v2023_v0  ;;  %v2026_v3 = vld [vmem:[%s3045_s0] sm:$0xff]   ;;  %v2347_v5 = vshrl.u32 %v47_v4, 7  ;;  %v2038_v24 = vld [vmem:[%s3045_s0 + $0x8] sm:$0xff]   ;;  %v2398_v28 = vld [vmem:[%s3047_s5 + $0x14] ss:$8 sps:$4 sm:$0xff]   ;;  %vm1918_vm2 = vcmask 7168  }
   0x3   :  { %101 = vmatpush1.bf16.msra.mxu0 %v2025_v2  ;;  %v45_v7 = vld [vmem:[%s3046_s3] sm:$0x3]  ;;  %v2379_v25 = vld [vmem:[%s3047_s5 + $0x4] ss:$8 sps:$4 sm:$0xff]   ;;  %v2408_v30 = vld [vmem:[%s3047_s5 + $0x10] ss:$8 sps:$4 sm:$0xff]  }
   0x4   :  { %v53_v6 = vsub.s32 1, %v2347_v5  ;;  %v49_v15 = vsub.s32 0, %v2347_v5  ;;  %v2384_v26 = vld [vmem:[%s3047_s5] ss:$8 sps:$4 sm:$0xff]   ;;  %294 = vmatprep.subr.bf16.mxu1 %v2379_v25  ;;  %v2391_v27 = vld [vmem:[%s3048_s2 + $0x4] ss:$8 sps:$4 sm:$0xff]  }
   0x5   :  { %295 = vmatpush1.bf16.msra.mxu1 %v2384_v26  ;;  %v2403_v29 = vld [vmem:[%s3048_s2] ss:$8 sps:$4 sm:$0xff]   ;;  %504 = vmatprep.subr.bf16.mxu0 %v2391_v27  ;;  %v2414_v31 = vld [vmem:[%s3047_s5 + $0x24] ss:$8 sps:$4 sm:$0xff]   ;;  %v2424_v33 = vld [vmem:[%s3048_s2 + $0x14] ss:$8 sps:$4 sm:$0xff]  }
   0x6   :  { %1937 = vmatmul.mubr.msk.bf16.vlgmr.msra.gmra.mrb[0].mxu0 %vm87_vm0, %v2026_v3  ;;  %v2355_v8 = vrot.slane %v45_v7, %v53_v6  ;;  %v2369_v16 = vrot.slane %v45_v7, %v49_v15  ;;  %296 = vmatprep.subr.bf16.mxu1 %v2398_v28  ;;  %v2430_v34 = vld [vmem:[%s3047_s5 + $0x20] ss:$8 sps:$4 sm:$0xff]   ;;  %v2435_v35 = vld [vmem:[%s3048_s2 + $0x10] ss:$8 sps:$4 sm:$0xff]   ;;  %v2442_v36 = vld [vmem:[%s3047_s5 + $0x34] ss:$8 sps:$4 sm:$0xff]  }
   0x7   :  { %142 = vmatprep.mubr.bf16.mxu0 %v2282_v1  ;;  %505 = vmatpush1.bf16.msra.mxu0 %v2403_v29  ;;  %v2449_v37 = vld [vmem:[%s3048_s2 + $0x24] ss:$8 sps:$4 sm:$0xff]   ;;  %v2454_v38 = vld [vmem:[%s3048_s2 + $0x20] ss:$8 sps:$4 sm:$0xff]   ;;  %v2460_v39 = vld [vmem:[%s3047_s5 + $0x30] ss:$8 sps:$4 sm:$0xff]  }
   0x8   :  { %506 = vmatprep.subr.bf16.mxu0 %v2424_v33  ;;  %v2467_v40 = vld [vmem:[%s3049_s4 + $0x4] ss:$8 sps:$4 sm:$0xff]   ;;  %v2056_v41 = vld [vmem:[%s3045_s0 + $0x18] sm:$0xff]   ;;  %v2488_v44 = vld [vmem:[%s3049_s4] ss:$8 sps:$4 sm:$0xff]  }
   0x9   :  { %297 = vmatpush1.bf16.msra.mxu1 %v2408_v30  ;;  %v2477_v42 = vld [vmem:[%s3048_s2 + $0x34] ss:$8 sps:$4 sm:$0xff]   ;;  %v2482_v43 = vld [vmem:[%s3048_s2 + $0x30] ss:$8 sps:$4 sm:$0xff]   ;;  %v2511_v47 = vld [vmem:[%s3049_s4 + $0x24] ss:$8 sps:$4 sm:$0xff]  }
   0xa   :  { %298 = vmatprep.subr.bf16.mxu1 %v2414_v31  ;;  %v2494_v45 = vld [vmem:[%s3049_s4 + $0x14] ss:$8 sps:$4 sm:$0xff]   ;;  %v2504_v46 = vld [vmem:[%s3049_s4 + $0x10] ss:$8 sps:$4 sm:$0xff]   ;;  %v2519_v48 = vld [vmem:[%s3049_s4 + $0x20] ss:$8 sps:$4 sm:$0xff]  }
   0xb   :  { %507 = vmatpush1.bf16.msra.mxu0 %v2435_v35  ;;  %v2526_v50 = vld [vmem:[%s3049_s4 + $0x34] ss:$8 sps:$4 sm:$0xff]   ;;  %v2531_v52 = vld [vmem:[%s3049_s4 + $0x30] ss:$8 sps:$4 sm:$0xff]  }
   0xc   :  { %508 = vmatprep.subr.bf16.mxu0 %v2449_v37 }
   0xd   :  { %299 = vmatpush1.bf16.msra.mxu1 %v2430_v34 }
   0xe   :  { %1938 = vmatmul.mubr.msk.bf16.gmra.mrb[4].mxu0 %vm87_vm0, %v2038_v24  ;;  %300 = vmatprep.subr.bf16.mxu1 %v2442_v36 }
   0xf   :  { %152 = vmatprep.mubr.bf16.mxu0 %v2282_v1  ;;  %509 = vmatpush1.bf16.msra.mxu0 %v2454_v38 }
  0x10   :  { %510 = vmatprep.subr.bf16.mxu0 %v2477_v42 }
  0x11   :  { %301 = vmatpush1.bf16.msra.mxu1 %v2460_v39 }
  0x12   :  { %378 = vmatprep.subr.bf16.mxu1 %v2467_v40 }
  0x13   :  { %511 = vmatpush1.bf16.msra.mxu0 %v2482_v43 }
  0x14   :  { %327 = vmatmul.mubr.bf16.vlgmr.msra.gmra.mrb[0].mxu1 %v2282_v1  ;;  %626 = vmatprep.subr.bf16.mxu0 %v2467_v40 }
  0x15   :  { %379 = vmatpush1.bf16.msra.mxu1 %v2488_v44  ;;  %410 = vmatprep.mubr.bf16.mxu1 %v2282_v1 }
  0x16   :  { %1939 = vmatmul.mubr.msk.bf16.gmra.mrb[8].mxu0 %vm87_vm0, %v2046_v32  ;;  %380 = vmatprep.subr.bf16.mxu1 %v2494_v45 }
  0x17   :  { %162 = vmatprep.mubr.bf16.mxu0 %v2282_v1 }
  0x19   :  { %381 = vmatpush1.bf16.msra.mxu1 %v2504_v46 }
  0x1a   :  { %382 = vmatprep.subr.bf16.mxu1 %v2511_v47 }
  0x1d   :  { %383 = vmatpush1.bf16.msra.mxu1 %v2519_v48 }
  0x1e   :  { %1940 = vmatmul.mubr.msk.bf16.gmra.mrb[12].mxu0 %vm87_vm0, %v2056_v41  ;;  %384 = vmatprep.subr.bf16.mxu1 %v2526_v50 }
  0x1f   :  { %536 = vmatprep.mubr.bf16.mxu0 %v2282_v1 }
  0x21   :  { %385 = vmatpush1.bf16.msra.mxu1 %v2531_v52 }
  0x22   :  { %582 = vmatprep.subr.bf16.mxu1 %v2379_v25 }
  0xd9   :  { %v134_v9 = vpop.f32.mrb[0].mxu0 }
  0xda   :  { %v136_v10 = vpop.f32.mrb[1].mxu0  ;;  %v135_v17 = vadd.f32 %v134_v9, %v2369_v16 }
  0xdb   :  { %v2358_v11 = vadd.f32 %v136_v10, %v2355_v8  ;;  %v2360_v12 = vpop.f32.mrb[2].mxu0 }
  0xdc   :  { %v2362_v13 = vpop.f32.mrb[3].mxu0  ;;  %v1941_v18 = vmul.f32 -1.442695, %v135_v17 }
  0xdd   :  { %2066 = vtanh.f32 %v2358_v11  ;;  %v1942_v55 = vmul.f32 -1.442695, %v2358_v11  ;;  %v141_v24 = vadd.f32 %v2362_v13, %v2355_v8 }
  0xde   :  { %2068 = vpow2.f32 %v1941_v18 }
  0xe1   :  { %v2541_v56 = vpop.f32.mrb[4].mxu0 }
  0xe2   :  { %v2543_v57 = vpop.f32.mrb[5].mxu0 }
  0xe3   :  { %v2545_v58 = vpop.f32.mrb[6].mxu0 }
  0xe4   :  { %v2547_v59 = vpop.f32.mrb[7].mxu0 }
  0xe7   :  { %v2067_v14 = vpop.eup %2066  ;;  %v328_v3 = vpop.f32.mrb[0].mxu1 }
  0xe8   :  { %218 = vrot.lane.b32.xlu0 %v2067_v14, %s2283_s1  ;;  %v2069_v19 = vpop.eup %2068  ;;  %v330_v7 = vpop.f32.mrb[1].mxu1 }
  0xe9   :  { %v209_v20 = vadd.f32 1.0, %v2069_v19  ;;  %v2549_v60 = vpop.f32.mrb[8].mxu0  ;;  %v332_v10 = vpop.f32.mrb[2].mxu1 }
  0xea   :  { %v2551_v61 = vpop.f32.mrb[9].mxu0  ;;  %v333_v14 = vpop.f32.mrb[3].mxu1 }
  0xeb   :  { %2070 = vrcp.f32 %v209_v20  ;;  %v2553_v62 = vpop.f32.mrb[10].mxu0 }
  0xec   :  { %v2555_v0 = vpop.f32.mrb[11].mxu0 }
  0xf1   :  { %v2557_v4 = vpop.f32.mrb[12].mxu0 }
  0xf2   :  { %v2559_v9 = vpop.f32.mrb[13].mxu0 }
  0xf3   :  { %v2561_v11 = vpop.f32.mrb[14].mxu0 }
  0xf4   :  { %v2563_v17 = vpop.f32.mrb[15].mxu0 }
  0xf5   :  { %v2071_v21 = vpop.eup %2070 }
  0xf6   :  { %v216_v49 = vmul.f32 0.0, %v2071_v21 }
 0x15a   :  { %v219_v22 = vpop.permute.xlu0 %218 }
 0x15b   :  { %v221_v23 = vmul.f32 %v2071_v21, %v219_v22  ;;  %v189_v22 = vld [vmem:[%s3050_s6] sm:$0x3] }
 0x15d   :  { %223 = vrot.lane.b32.xlu0 %v221_v23, %s2283_s1  ;;  %v139_v23 = vadd.f32 %v2360_v12, %v2369_v16 }
 0x1cf   :  { %v224_v51 = vpop.permute.xlu0 %223 }
 0x1d0   :  { %v2533_v53 = vadd.f32 %v224_v51, %v216_v49  ;;  %v2594_v49 = vrot.slane %v189_v22, %v53_v6  ;;  %v2601_v6 = vrot.slane %v189_v22, %v49_v15 }
 0x1d2   :  { %2072 = vtanh.f32 %v2533_v53 }
 0x1d3   :  { %2074 = vpow2.f32 %v1942_v55 }
 0x1dc   :  { %v2073_v54 = vpop.eup %2072 }
 0x1dd   :  { %229 = vrot.lane.b32.xlu1 %v2073_v54, %s2283_s1  ;;  %v2075_v63 = vpop.eup %2074 }
 0x1de   :  { %v210_v2 = vadd.f32 1.0, %v2075_v63 }
 0x1e0   :  { %2076 = vrcp.f32 %v210_v2 }
 0x1ea   :  { %v2077_v18 = vpop.eup %2076 }
 0x24f   :  { %v230_v19 = vpop.permute.xlu1 %229 }
 0x250   :  { %v232_v20 = vmul.f32 %v2077_v18, %v230_v19 }
 0x252   :  { %v233_v21 = vpack.c.bf16 %v232_v20, %v232_v20 }
 0x254   :  { %1959 = vmatmul.mubr.msk.bf16.vlgmr.msra.gmra.mrb[4].mxu1 %vm290_vm1, %v233_v21  ;;  %1970 = vmatmul.mubr.msk.bf16.vlgmr.msra.gmra.mrb[16].mxu0 %vm290_vm1, %v233_v21 }
 0x255   :  { %627 = vmatpush1.bf16.msra.mxu0 %v2488_v44  ;;  %583 = vmatpush1.bf16.msra.mxu1 %v2384_v26 }
 0x256   :  { %628 = vmatprep.subr.bf16.mxu0 %v2494_v45  ;;  %584 = vmatprep.subr.bf16.mxu1 %v2398_v28 }
 0x257   :  { %658 = vmatprep.mubr.bf16.mxu0 %v2282_v1  ;;  %614 = vmatprep.mubr.bf16.mxu1 %v2282_v1 }
 0x259   :  { %629 = vmatpush1.bf16.msra.mxu0 %v2504_v46  ;;  %585 = vmatpush1.bf16.msra.mxu1 %v2408_v30 }
 0x25a   :  { %630 = vmatprep.subr.bf16.mxu0 %v2511_v47  ;;  %586 = vmatprep.subr.bf16.mxu1 %v2414_v31 }
 0x25d   :  { %631 = vmatpush1.bf16.msra.mxu0 %v2519_v48  ;;  %587 = vmatpush1.bf16.msra.mxu1 %v2430_v34 }
 0x25e   :  { %632 = vmatprep.subr.bf16.mxu0 %v2526_v50  ;;  %588 = vmatprep.subr.bf16.mxu1 %v2442_v36 }
 0x261   :  { %633 = vmatpush1.bf16.msra.mxu0 %v2531_v52  ;;  %589 = vmatpush1.bf16.msra.mxu1 %v2460_v39 }
 0x262   :  { %704 = vmatprep.subr.bf16.mxu1 %v2391_v27  ;;  %782 = vmatprep.subr.bf16.mxu0 %v2379_v25 }
 0x327   :  { %v412_v32 = vpop.f32.mrb[4].mxu1  ;;  %v538_v41 = vpop.f32.mrb[16].mxu0 }
 0x328   :  { %v413_v51 = vadd.f32 %v412_v32, %v328_v3  ;;  %v545_v54 = vadd.f32 %v538_v41, %v139_v23  ;;  %v414_v55 = vpop.f32.mrb[5].mxu1  ;;  %v540_v63 = vpop.f32.mrb[17].mxu0 }
 0x329   :  { %v415_v2 = vadd.f32 %v414_v55, %v330_v7  ;;  %v546_v10 = vadd.f32 %v540_v63, %v141_v24  ;;  %v416_v14 = vpop.f32.mrb[6].mxu1  ;;  %v542_v18 = vpop.f32.mrb[18].mxu0 }
 0x32a   :  { %v417_v19 = vpop.f32.mrb[7].mxu1  ;;  %v543_v20 = vpop.f32.mrb[19].mxu0  ;;  %v419_v3 = vadd.f32 %v413_v51, %v2601_v6  ;;  %v1971_v7 = vmul.f32 -1.442695, %v545_v54 }
 0x32b   :  { %v420_v12 = vadd.f32 %v415_v2, %v2594_v49  ;;  %2078 = vtanh.f32 %v546_v10 }
 0x32c   :  { %v1960_v23 = vmul.f32 -1.442695, %v419_v3 }
 0x32d   :  { %2080 = vtanh.f32 %v420_v12 }
 0x32e   :  { %2082 = vpow2.f32 %v1971_v7  ;;  %v1972_v7 = vmul.f32 -1.442695, %v546_v10 }
 0x32f   :  { %2084 = vpow2.f32 %v1960_v23  ;;  %v1961_v23 = vmul.f32 -1.442695, %v420_v12 }
 0x335   :  { %v2079_v13 = vpop.eup %2078 }
 0x336   :  { %562 = vrot.lane.b32.xlu0 %v2079_v13, %s2283_s1 }
 0x337   :  { %v2081_v21 = vpop.eup %2080 }
 0x338   :  { %436 = vrot.lane.b32.xlu1 %v2081_v21, %s2283_s1  ;;  %v2083_v24 = vpop.eup %2082 }
 0x339   :  { %v2085_v32 = vpop.eup %2084  ;;  %v553_v41 = vadd.f32 1.0, %v2083_v24 }
 0x33a   :  { %v427_v55 = vadd.f32 1.0, %v2085_v32 }
 0x33b   :  { %2086 = vrcp.f32 %v553_v41 }
 0x33c   :  { %2088 = vrcp.f32 %v427_v55 }
 0x345   :  { %v2087_v63 = vpop.eup %2086 }
 0x346   :  { %v2089_v18 = vpop.eup %2088  ;;  %v560_v15 = vmul.f32 %v2087_v63, %v2533_v53 }
 0x347   :  { %v434_v54 = vmul.f32 0.0, %v2089_v18 }
 0x3a8   :  { %v563_v2 = vpop.permute.xlu0 %562 }
 0x3a9   :  { %v565_v14 = vmul.f32 %v2087_v63, %v563_v2 }
 0x3aa   :  { %v437_v19 = vpop.permute.xlu1 %436 }
 0x3ab   :  { %v439_v5 = vmul.f32 %v2089_v18, %v437_v19  ;;  %567 = vrot.lane.b32.xlu0 %v565_v14, %s2283_s1 }
 0x3ad   :  { %441 = vrot.lane.b32.xlu1 %v439_v5, %s2283_s1 }
 0x41d   :  { %v568_v22 = vpop.permute.xlu0 %567 }
 0x41e   :  { %v2607_v51 = vadd.f32 %v568_v22, %v560_v15 }
 0x41f   :  { %v442_v20 = vpop.permute.xlu1 %441 }
 0x420   :  { %2090 = vtanh.f32 %v2607_v51  ;;  %v2610_v13 = vadd.f32 %v442_v20, %v434_v54 }
 0x422   :  { %2092 = vtanh.f32 %v2610_v13 }
 0x423   :  { %2094 = vpow2.f32 %v1972_v7 }
 0x424   :  { %2096 = vpow2.f32 %v1961_v23 }
 0x42a   :  { %v2091_v21 = vpop.eup %2090 }
 0x42b   :  { %573 = vrot.lane.b32.xlu0 %v2091_v21, %s2283_s1 }
 0x42c   :  { %v2093_v3 = vpop.eup %2092 }
 0x42d   :  { %447 = vrot.lane.b32.xlu1 %v2093_v3, %s2283_s1  ;;  %v2095_v53 = vpop.eup %2094 }
 0x42e   :  { %v2097_v24 = vpop.eup %2096  ;;  %v554_v32 = vadd.f32 1.0, %v2095_v53 }
 0x42f   :  { %v428_v41 = vadd.f32 1.0, %v2097_v24 }
 0x430   :  { %2098 = vrcp.f32 %v554_v32  ;;  %v145_v32 = vadd.f32 %v2541_v56, %v2369_v16 }
 0x431   :  { %2100 = vrcp.f32 %v428_v41 }
 0x43a   :  { %v2099_v55 = vpop.eup %2098 }
 0x43b   :  { %v2101_v14 = vpop.eup %2100 }
 0x49d   :  { %v574_v63 = vpop.permute.xlu0 %573 }
 0x49e   :  { %v576_v2 = vmul.f32 %v2099_v55, %v574_v63  ;;  %v147_v55 = vadd.f32 %v2543_v57, %v2355_v8 }
 0x49f   :  { %v448_v18 = vpop.permute.xlu1 %447 }
 0x4a0   :  { %v577_v19 = vpack.c.bf16 %v576_v2, %v576_v2  ;;  %v450_v5 = vmul.f32 %v2101_v14, %v448_v18 }
 0x4a2   :  { %v578_v15 = vpack.c.bf16 %v450_v5, %v450_v5  ;;  %1974 = vmatmul.mubr.msk.bf16.vlgmr.msra.gmra.mrb[20].mxu0 %vm290_vm1, %v577_v19 }
 0x4a3   :  { %783 = vmatpush1.bf16.msra.mxu0 %v2384_v26  ;;  %814 = vmatprep.mubr.bf16.mxu0 %v2282_v1 }
 0x4a4   :  { %1973 = vmatmul.mubr.msk.bf16.vlgmr.msra.gmra.mrb[8].mxu1 %vm290_vm1, %v578_v15  ;;  %784 = vmatprep.subr.bf16.mxu0 %v2398_v28 }
 0x4a5   :  { %705 = vmatpush1.bf16.msra.mxu1 %v2403_v29  ;;  %736 = vmatprep.mubr.bf16.mxu1 %v2282_v1 }
 0x4a6   :  { %706 = vmatprep.subr.bf16.mxu1 %v2424_v33 }
 0x4a7   :  { %785 = vmatpush1.bf16.msra.mxu0 %v2408_v30 }
 0x4a8   :  { %786 = vmatprep.subr.bf16.mxu0 %v2414_v31 }
 0x4a9   :  { %707 = vmatpush1.bf16.msra.mxu1 %v2435_v35 }
 0x4aa   :  { %708 = vmatprep.subr.bf16.mxu1 %v2449_v37 }
 0x4ab   :  { %787 = vmatpush1.bf16.msra.mxu0 %v2430_v34 }
 0x4ac   :  { %788 = vmatprep.subr.bf16.mxu0 %v2442_v36 }
 0x4ad   :  { %709 = vmatpush1.bf16.msra.mxu1 %v2454_v38 }
 0x4ae   :  { %710 = vmatprep.subr.bf16.mxu1 %v2477_v42 }
 0x4af   :  { %789 = vmatpush1.bf16.msra.mxu0 %v2460_v39 }
 0x4b0   :  { %904 = vmatprep.subr.bf16.mxu0 %v2391_v27 }
 0x4b1   :  { %711 = vmatpush1.bf16.msra.mxu1 %v2482_v43 }
 0x4b2   :  { %826 = vmatprep.subr.bf16.mxu1 %v2467_v40 }
 0x4b4   :  { %1977 = vmatmul.mubr.msk.bf16.vlgmr.msra.gmra.mrb[12].mxu1 %vm290_vm1, %v577_v19 }
 0x4b5   :  { %827 = vmatpush1.bf16.msra.mxu1 %v2488_v44  ;;  %858 = vmatprep.mubr.bf16.mxu1 %v2282_v1 }
 0x4b6   :  { %828 = vmatprep.subr.bf16.mxu1 %v2494_v45 }
 0x4b9   :  { %829 = vmatpush1.bf16.msra.mxu1 %v2504_v46 }
 0x4ba   :  { %830 = vmatprep.subr.bf16.mxu1 %v2511_v47 }
 0x4bd   :  { %831 = vmatpush1.bf16.msra.mxu1 %v2519_v48 }
 0x4be   :  { %832 = vmatprep.subr.bf16.mxu1 %v2526_v50 }
 0x4c1   :  { %833 = vmatpush1.bf16.msra.mxu1 %v2531_v52 }
 0x4c2   :  { %982 = vmatprep.subr.bf16.mxu1 %v2379_v25 }
 0x575   :  { %v660_v10 = vpop.f32.mrb[20].mxu0 }
 0x576   :  { %v662_v12 = vpop.f32.mrb[21].mxu0 }
 0x577   :  { %v616_v22 = vpop.f32.mrb[8].mxu1  ;;  %v664_v54 = vpop.f32.mrb[22].mxu0 }
 0x578   :  { %v661_v20 = vadd.f32 %v660_v10, %v616_v22  ;;  %v618_v21 = vpop.f32.mrb[9].mxu1  ;;  %v665_v3 = vpop.f32.mrb[23].mxu0 }
 0x579   :  { %v663_v7 = vadd.f32 %v662_v12, %v618_v21  ;;  %v620_v23 = vpop.f32.mrb[10].mxu1 }
 0x57a   :  { %v621_v53 = vpop.f32.mrb[11].mxu1  ;;  %v667_v10 = vadd.f32 %v661_v20, %v2601_v6 }
 0x57b   :  { %v668_v24 = vadd.f32 %v663_v7, %v2594_v49 }
 0x57c   :  { %v1975_v12 = vmul.f32 -1.442695, %v667_v10 }
 0x57d   :  { %2102 = vtanh.f32 %v668_v24  ;;  %v1976_v10 = vmul.f32 -1.442695, %v668_v24 }
 0x587   :  { %v2103_v41 = vpop.eup %2102  ;;  %v738_v63 = vpop.f32.mrb[12].mxu1 }
 0x588   :  { %v745_v2 = vadd.f32 %v738_v63, %v145_v32  ;;  %v740_v14 = vpop.f32.mrb[13].mxu1  ;;  %684 = vrot.lane.b32.xlu1 %v2103_v41, %s2283_s1 }
 0x589   :  { %v746_v18 = vadd.f32 %v740_v14, %v147_v55  ;;  %v742_v19 = vpop.f32.mrb[14].mxu1 }
 0x58a   :  { %v743_v5 = vpop.f32.mrb[15].mxu1  ;;  %v1978_v54 = vmul.f32 -1.442695, %v745_v2 }
 0x58b   :  { %2104 = vtanh.f32 %v746_v18 }
 0x58c   :  { %2106 = vpow2.f32 %v1975_v12 }
 0x595   :  { %v2105_v15 = vpop.eup %2104 }
 0x596   :  { %762 = vrot.lane.b32.xlu0 %v2105_v15, %s2283_s1  ;;  %v2107_v56 = vpop.eup %2106 }
 0x597   :  { %v675_v22 = vadd.f32 1.0, %v2107_v56  ;;  %v1979_v56 = vmul.f32 -1.442695, %v746_v18 }
 0x599   :  { %2108 = vrcp.f32 %v675_v22 }
 0x59a   :  { %2110 = vpow2.f32 %v1978_v54 }
 0x5a3   :  { %v2109_v57 = vpop.eup %2108 }
 0x5a4   :  { %v2111_v3 = vpop.eup %2110  ;;  %v682_v20 = vmul.f32 %v2109_v57, %v2610_v13 }
 0x5a5   :  { %v753_v23 = vadd.f32 1.0, %v2111_v3 }
 0x5a7   :  { %2112 = vrcp.f32 %v753_v23 }
 0x5b1   :  { %v2113_v53 = vpop.eup %2112 }
 0x5b2   :  { %v760_v14 = vmul.f32 %v2113_v53, %v2607_v51 }
 0x5fa   :  { %v685_v21 = vpop.permute.xlu1 %684 }
 0x5fb   :  { %v687_v7 = vmul.f32 %v2109_v57, %v685_v21 }
 0x5fd   :  { %689 = vrot.lane.b32.xlu1 %v687_v7, %s2283_s1 }
 0x608   :  { %v763_v32 = vpop.permute.xlu0 %762 }
 0x609   :  { %v765_v41 = vmul.f32 %v2113_v53, %v763_v32 }
 0x60b   :  { %767 = vrot.lane.b32.xlu0 %v765_v41, %s2283_s1 }
 0x66f   :  { %v690_v55 = vpop.permute.xlu1 %689 }
 0x670   :  { %v2656_v63 = vadd.f32 %v690_v55, %v682_v20  ;;  %v149_v55 = vadd.f32 %v2545_v58, %v2369_v16 }
 0x672   :  { %2114 = vtanh.f32 %v2656_v63 }
 0x67c   :  { %v2115_v2 = vpop.eup %2114 }
 0x67d   :  { %695 = vrot.lane.b32.xlu1 %v2115_v2, %s2283_s1  ;;  %v768_v19 = vpop.permute.xlu0 %767  ;;  %v151_v2 = vadd.f32 %v2547_v59, %v2355_v8 }
 0x67e   :  { %v2661_v5 = vadd.f32 %v768_v19, %v760_v14 }
 0x680   :  { %2116 = vtanh.f32 %v2661_v5 }
 0x681   :  { %2118 = vpow2.f32 %v1976_v10 }
 0x68a   :  { %v2117_v15 = vpop.eup %2116 }
 0x68b   :  { %773 = vrot.lane.b32.xlu0 %v2117_v15, %s2283_s1  ;;  %v2119_v13 = vpop.eup %2118 }
 0x68c   :  { %v676_v12 = vadd.f32 1.0, %v2119_v13 }
 0x68e   :  { %2120 = vrcp.f32 %v676_v12 }
 0x68f   :  { %2122 = vpow2.f32 %v1979_v56 }
 0x698   :  { %v2121_v22 = vpop.eup %2120 }
 0x699   :  { %v2123_v57 = vpop.eup %2122 }
 0x69a   :  { %v754_v3 = vadd.f32 1.0, %v2123_v57 }
 0x69c   :  { %2124 = vrcp.f32 %v754_v3 }
 0x6a6   :  { %v2125_v24 = vpop.eup %2124 }
 0x6ef   :  { %v696_v54 = vpop.permute.xlu1 %695 }
 0x6f0   :  { %v698_v21 = vmul.f32 %v2121_v22, %v696_v54 }
 0x6f2   :  { %v778_v51 = vpack.c.bf16 %v698_v21, %v698_v21 }
 0x6f4   :  { %1980 = vmatmul.mubr.msk.bf16.vlgmr.msra.gmra.mrb[24].mxu0 %vm290_vm1, %v778_v51 }
 0x6f5   :  { %905 = vmatpush1.bf16.msra.mxu0 %v2403_v29  ;;  %936 = vmatprep.mubr.bf16.mxu0 %v2282_v1 }
 0x6f6   :  { %906 = vmatprep.subr.bf16.mxu0 %v2424_v33 }
 0x6f9   :  { %907 = vmatpush1.bf16.msra.mxu0 %v2435_v35 }
 0x6fa   :  { %908 = vmatprep.subr.bf16.mxu0 %v2449_v37 }
 0x6fd   :  { %909 = vmatpush1.bf16.msra.mxu0 %v2454_v38  ;;  %v774_v18 = vpop.permute.xlu0 %773 }
 0x6fe   :  { %910 = vmatprep.subr.bf16.mxu0 %v2477_v42  ;;  %v776_v7 = vmul.f32 %v2125_v24, %v774_v18 }
 0x700   :  { %v777_v23 = vpack.c.bf16 %v776_v7, %v776_v7 }
 0x701   :  { %911 = vmatpush1.bf16.msra.mxu0 %v2482_v43 }
 0x702   :  { %1026 = vmatprep.subr.bf16.mxu0 %v2467_v40  ;;  %1981 = vmatmul.mubr.msk.bf16.vlgmr.msra.gmra.mrb[16].mxu1 %vm290_vm1, %v777_v23 }
 0x703   :  { %983 = vmatpush1.bf16.msra.mxu1 %v2384_v26  ;;  %1014 = vmatprep.mubr.bf16.mxu1 %v2282_v1 }
 0x704   :  { %1984 = vmatmul.mubr.msk.bf16.vlgmr.msra.gmra.mrb[28].mxu0 %vm290_vm1, %v777_v23  ;;  %984 = vmatprep.subr.bf16.mxu1 %v2398_v28 }
 0x705   :  { %1027 = vmatpush1.bf16.msra.mxu0 %v2488_v44  ;;  %1058 = vmatprep.mubr.bf16.mxu0 %v2282_v1 }
 0x706   :  { %1028 = vmatprep.subr.bf16.mxu0 %v2494_v45 }
 0x707   :  { %985 = vmatpush1.bf16.msra.mxu1 %v2408_v30 }
 0x708   :  { %986 = vmatprep.subr.bf16.mxu1 %v2414_v31 }
 0x709   :  { %1029 = vmatpush1.bf16.msra.mxu0 %v2504_v46 }
 0x70a   :  { %1030 = vmatprep.subr.bf16.mxu0 %v2511_v47 }
 0x70b   :  { %987 = vmatpush1.bf16.msra.mxu1 %v2430_v34 }
 0x70c   :  { %988 = vmatprep.subr.bf16.mxu1 %v2442_v36 }
 0x70d   :  { %1031 = vmatpush1.bf16.msra.mxu0 %v2519_v48 }
 0x70e   :  { %1032 = vmatprep.subr.bf16.mxu0 %v2526_v50 }
 0x70f   :  { %989 = vmatpush1.bf16.msra.mxu1 %v2460_v39 }
 0x710   :  { %1104 = vmatprep.subr.bf16.mxu1 %v2391_v27 }
 0x711   :  { %1033 = vmatpush1.bf16.msra.mxu0 %v2531_v52 }
 0x712   :  { %1182 = vmatprep.subr.bf16.mxu0 %v2379_v25 }
 0x7c7   :  { %v816_v53 = vpop.f32.mrb[24].mxu0 }
 0x7c8   :  { %v818_v32 = vpop.f32.mrb[25].mxu0 }
 0x7c9   :  { %v820_v41 = vpop.f32.mrb[26].mxu0 }
 0x7ca   :  { %v821_v20 = vpop.f32.mrb[27].mxu0 }
 0x7d5   :  { %v860_v14 = vpop.f32.mrb[16].mxu1 }
 0x7d6   :  { %v861_v15 = vadd.f32 %v860_v14, %v816_v53  ;;  %v862_v10 = vpop.f32.mrb[17].mxu1 }
 0x7d7   :  { %v938_v19 = vpop.f32.mrb[28].mxu0  ;;  %v863_v56 = vadd.f32 %v862_v10, %v818_v32  ;;  %v864_v22 = vpop.f32.mrb[18].mxu1 }
 0x7d8   :  { %v945_v13 = vadd.f32 %v938_v19, %v149_v55  ;;  %v940_v12 = vpop.f32.mrb[29].mxu0  ;;  %v865_v21 = vpop.f32.mrb[19].mxu1  ;;  %v867_v24 = vadd.f32 %v861_v15, %v2601_v6 }
 0x7d9   :  { %v946_v54 = vadd.f32 %v940_v12, %v151_v2  ;;  %v942_v57 = vpop.f32.mrb[30].mxu0  ;;  %v868_v3 = vadd.f32 %v863_v56, %v2594_v49 }
 0x7da   :  { %v943_v51 = vpop.f32.mrb[31].mxu0  ;;  %v1985_v18 = vmul.f32 -1.442695, %v945_v13  ;;  %v1982_v7 = vmul.f32 -1.442695, %v867_v24 }
 0x7db   :  { %2126 = vtanh.f32 %v946_v54 }
 0x7dc   :  { %2128 = vtanh.f32 %v868_v3 }
 0x7dd   :  { %2130 = vpow2.f32 %v1985_v18 }
 0x7de   :  { %2132 = vpow2.f32 %v1982_v7 }
 0x7e5   :  { %v2127_v58 = vpop.eup %2126 }
 0x7e6   :  { %962 = vrot.lane.b32.xlu0 %v2127_v58, %s2283_s1  ;;  %v2129_v59 = vpop.eup %2128  ;;  %v1986_v58 = vmul.f32 -1.442695, %v946_v54 }
 0x7e7   :  { %884 = vrot.lane.b32.xlu1 %v2129_v59, %s2283_s1  ;;  %v2131_v23 = vpop.eup %2130 }
 0x7e8   :  { %v2133_v53 = vpop.eup %2132  ;;  %v953_v32 = vadd.f32 1.0, %v2131_v23 }
 0x7e9   :  { %v875_v41 = vadd.f32 1.0, %v2133_v53 }
 0x7ea   :  { %2134 = vrcp.f32 %v953_v32 }
 0x7eb   :  { %2136 = vrcp.f32 %v875_v41 }
 0x7f4   :  { %v2135_v20 = vpop.eup %2134 }
 0x7f5   :  { %v2137_v14 = vpop.eup %2136  ;;  %v960_v15 = vmul.f32 %v2135_v20, %v2661_v5  ;;  %v1983_v5 = vmul.f32 -1.442695, %v868_v3 }
 0x7f6   :  { %v882_v56 = vmul.f32 %v2137_v14, %v2656_v63 }
 0x858   :  { %v963_v55 = vpop.permute.xlu0 %962 }
 0x859   :  { %v965_v2 = vmul.f32 %v2135_v20, %v963_v55  ;;  %v885_v19 = vpop.permute.xlu1 %884 }
 0x85a   :  { %v887_v10 = vmul.f32 %v2137_v14, %v885_v19 }
 0x85b   :  { %967 = vrot.lane.b32.xlu0 %v965_v2, %s2283_s1 }
 0x85c   :  { %889 = vrot.lane.b32.xlu1 %v887_v10, %s2283_s1  ;;  %v155_v10 = vadd.f32 %v2549_v60, %v2369_v16 }
 0x8cd   :  { %v968_v13 = vpop.permute.xlu0 %967 }
 0x8ce   :  { %v2706_v12 = vadd.f32 %v968_v13, %v960_v15  ;;  %v890_v22 = vpop.permute.xlu1 %889 }
 0x8cf   :  { %v2710_v57 = vadd.f32 %v890_v22, %v882_v56 }
 0x8d0   :  { %2138 = vtanh.f32 %v2706_v12 }
 0x8d1   :  { %2140 = vtanh.f32 %v2710_v57 }
 0x8d2   :  { %2142 = vpow2.f32 %v1986_v58 }
 0x8d3   :  { %2144 = vpow2.f32 %v1983_v5 }
 0x8da   :  { %v2139_v21 = vpop.eup %2138 }
 0x8db   :  { %973 = vrot.lane.b32.xlu0 %v2139_v21, %s2283_s1  ;;  %v2141_v51 = vpop.eup %2140 }
 0x8dc   :  { %895 = vrot.lane.b32.xlu1 %v2141_v51, %s2283_s1  ;;  %v2143_v59 = vpop.eup %2142 }
 0x8dd   :  { %v2145_v24 = vpop.eup %2144  ;;  %v954_v63 = vadd.f32 1.0, %v2143_v59 }
 0x8de   :  { %v876_v18 = vadd.f32 1.0, %v2145_v24 }
 0x8df   :  { %2146 = vrcp.f32 %v954_v63 }
 0x8e0   :  { %2148 = vrcp.f32 %v876_v18 }
 0x8e9   :  { %v2147_v7 = vpop.eup %2146 }
 0x8ea   :  { %v2149_v32 = vpop.eup %2148 }
 0x94d   :  { %v974_v23 = vpop.permute.xlu0 %973 }
 0x94e   :  { %v976_v53 = vmul.f32 %v2147_v7, %v974_v23  ;;  %v896_v41 = vpop.permute.xlu1 %895 }
 0x94f   :  { %v898_v55 = vmul.f32 %v2149_v32, %v896_v41 }
 0x950   :  { %v977_v20 = vpack.c.bf16 %v976_v53, %v976_v53 }
 0x951   :  { %v978_v2 = vpack.c.bf16 %v898_v55, %v898_v55 }
 0x952   :  { %1988 = vmatmul.mubr.msk.bf16.vlgmr.msra.gmra.mrb[32].mxu0 %vm290_vm1, %v977_v20 }
 0x953   :  { %1183 = vmatpush1.bf16.msra.mxu0 %v2384_v26  ;;  %1214 = vmatprep.mubr.bf16.mxu0 %v2282_v1 }
 0x954   :  { %1987 = vmatmul.mubr.msk.bf16.vlgmr.msra.gmra.mrb[20].mxu1 %vm290_vm1, %v978_v2  ;;  %1184 = vmatprep.subr.bf16.mxu0 %v2398_v28 }
 0x955   :  { %1105 = vmatpush1.bf16.msra.mxu1 %v2403_v29  ;;  %1136 = vmatprep.mubr.bf16.mxu1 %v2282_v1 }
 0x956   :  { %1106 = vmatprep.subr.bf16.mxu1 %v2424_v33 }
 0x957   :  { %1185 = vmatpush1.bf16.msra.mxu0 %v2408_v30 }
 0x958   :  { %1186 = vmatprep.subr.bf16.mxu0 %v2414_v31 }
 0x959   :  { %1107 = vmatpush1.bf16.msra.mxu1 %v2435_v35 }
 0x95a   :  { %1108 = vmatprep.subr.bf16.mxu1 %v2449_v37 }
 0x95b   :  { %1187 = vmatpush1.bf16.msra.mxu0 %v2430_v34 }
 0x95c   :  { %1188 = vmatprep.subr.bf16.mxu0 %v2442_v36 }
 0x95d   :  { %1109 = vmatpush1.bf16.msra.mxu1 %v2454_v38 }
 0x95e   :  { %1110 = vmatprep.subr.bf16.mxu1 %v2477_v42 }
 0x95f   :  { %1189 = vmatpush1.bf16.msra.mxu0 %v2460_v39 }
 0x960   :  { %1304 = vmatprep.subr.bf16.mxu0 %v2391_v27 }
 0x961   :  { %1111 = vmatpush1.bf16.msra.mxu1 %v2482_v43 }
 0x962   :  { %1226 = vmatprep.subr.bf16.mxu1 %v2467_v40 }
 0x964   :  { %1991 = vmatmul.mubr.msk.bf16.vlgmr.msra.gmra.mrb[24].mxu1 %vm290_vm1, %v977_v20 }
 0x965   :  { %1227 = vmatpush1.bf16.msra.mxu1 %v2488_v44  ;;  %1258 = vmatprep.mubr.bf16.mxu1 %v2282_v1 }
 0x966   :  { %1228 = vmatprep.subr.bf16.mxu1 %v2494_v45 }
 0x969   :  { %1229 = vmatpush1.bf16.msra.mxu1 %v2504_v46 }
 0x96a   :  { %1230 = vmatprep.subr.bf16.mxu1 %v2511_v47 }
 0x96d   :  { %1231 = vmatpush1.bf16.msra.mxu1 %v2519_v48 }
 0x96e   :  { %1232 = vmatprep.subr.bf16.mxu1 %v2526_v50 }
 0x971   :  { %1233 = vmatpush1.bf16.msra.mxu1 %v2531_v52 }
 0x972   :  { %1382 = vmatprep.subr.bf16.mxu1 %v2379_v25  ;;  %v157_v25 = vadd.f32 %v2551_v61, %v2355_v8 }
 0xa25   :  { %v1060_v26 = vpop.f32.mrb[32].mxu0 }
 0xa26   :  { %v1062_v27 = vpop.f32.mrb[33].mxu0 }
 0xa27   :  { %v1016_v28 = vpop.f32.mrb[20].mxu1  ;;  %v1064_v30 = vpop.f32.mrb[34].mxu0 }
 0xa28   :  { %v1061_v31 = vadd.f32 %v1060_v26, %v1016_v28  ;;  %v1018_v34 = vpop.f32.mrb[21].mxu1  ;;  %v1065_v36 = vpop.f32.mrb[35].mxu0 }
 0xa29   :  { %v1063_v54 = vadd.f32 %v1062_v27, %v1018_v34  ;;  %v1020_v3 = vpop.f32.mrb[22].mxu1 }
 0xa2a   :  { %v1021_v14 = vpop.f32.mrb[23].mxu1  ;;  %v1067_v59 = vadd.f32 %v1061_v31, %v2601_v6 }
 0xa2b   :  { %v1068_v19 = vadd.f32 %v1063_v54, %v2594_v49 }
 0xa2c   :  { %v1989_v24 = vmul.f32 -1.442695, %v1067_v59 }
 0xa2d   :  { %2150 = vtanh.f32 %v1068_v19  ;;  %v1990_v54 = vmul.f32 -1.442695, %v1068_v19 }
 0xa37   :  { %v2151_v15 = vpop.eup %2150  ;;  %v1138_v13 = vpop.f32.mrb[24].mxu1 }
 0xa38   :  { %v1145_v56 = vadd.f32 %v1138_v13, %v155_v10  ;;  %v1140_v22 = vpop.f32.mrb[25].mxu1  ;;  %1084 = vrot.lane.b32.xlu1 %v2151_v15, %s2283_s1 }
 0xa39   :  { %v1146_v21 = vadd.f32 %v1140_v22, %v157_v25  ;;  %v1142_v51 = vpop.f32.mrb[26].mxu1 }
 0xa3a   :  { %v1143_v58 = vpop.f32.mrb[27].mxu1  ;;  %v1992_v18 = vmul.f32 -1.442695, %v1145_v56 }
 0xa3b   :  { %2152 = vtanh.f32 %v1146_v21  ;;  %v1993_v14 = vmul.f32 -1.442695, %v1146_v21 }
 0xa3c   :  { %2154 = vpow2.f32 %v1989_v24 }
 0xa45   :  { %v2153_v5 = vpop.eup %2152 }
 0xa46   :  { %1162 = vrot.lane.b32.xlu0 %v2153_v5, %s2283_s1  ;;  %v2155_v60 = vpop.eup %2154 }
 0xa47   :  { %v1075_v63 = vadd.f32 1.0, %v2155_v60 }
 0xa49   :  { %2156 = vrcp.f32 %v1075_v63 }
 0xa4a   :  { %2158 = vpow2.f32 %v1992_v18 }
 0xa53   :  { %v2157_v61 = vpop.eup %2156 }
 0xa54   :  { %v2159_v23 = vpop.eup %2158  ;;  %v1082_v2 = vmul.f32 %v2157_v61, %v2710_v57 }
 0xa55   :  { %v1153_v32 = vadd.f32 1.0, %v2159_v23 }
 0xa57   :  { %2160 = vrcp.f32 %v1153_v32 }
 0xa61   :  { %v2161_v41 = vpop.eup %2160 }
 0xa62   :  { %v1160_v30 = vmul.f32 %v2161_v41, %v2706_v12 }
 0xaaa   :  { %v1085_v7 = vpop.permute.xlu1 %1084 }
 0xaab   :  { %v1087_v53 = vmul.f32 %v2157_v61, %v1085_v7 }
 0xaad   :  { %1089 = vrot.lane.b32.xlu1 %v1087_v53, %s2283_s1 }
 0xab8   :  { %v1163_v20 = vpop.permute.xlu0 %1162 }
 0xab9   :  { %v1165_v55 = vmul.f32 %v2161_v41, %v1163_v20 }
 0xabb   :  { %1167 = vrot.lane.b32.xlu0 %v1165_v55, %s2283_s1 }
 0xb1f   :  { %v1090_v26 = vpop.permute.xlu1 %1089 }
 0xb20   :  { %v2756_v27 = vadd.f32 %v1090_v26, %v1082_v2 }
 0xb22   :  { %2162 = vtanh.f32 %v2756_v27 }
 0xb2c   :  { %v2163_v28 = vpop.eup %2162 }
 0xb2d   :  { %1095 = vrot.lane.b32.xlu1 %v2163_v28, %s2283_s1  ;;  %v1168_v31 = vpop.permute.xlu0 %1167 }
 0xb2e   :  { %v2761_v34 = vadd.f32 %v1168_v31, %v1160_v30 }
 0xb30   :  { %2164 = vtanh.f32 %v2761_v34 }
 0xb31   :  { %2166 = vpow2.f32 %v1990_v54 }
 0xb3a   :  { %v2165_v36 = vpop.eup %2164 }
 0xb3b   :  { %1173 = vrot.lane.b32.xlu0 %v2165_v36, %s2283_s1  ;;  %v2167_v57 = vpop.eup %2166 }
 0xb3c   :  { %v1076_v3 = vadd.f32 1.0, %v2167_v57 }
 0xb3e   :  { %2168 = vrcp.f32 %v1076_v3 }
 0xb3f   :  { %2170 = vpow2.f32 %v1993_v14 }
 0xb48   :  { %v2169_v10 = vpop.eup %2168 }
 0xb49   :  { %v2171_v25 = vpop.eup %2170 }
 0xb4a   :  { %v1154_v56 = vadd.f32 1.0, %v2171_v25 }
 0xb4c   :  { %2172 = vrcp.f32 %v1154_v56 }
 0xb56   :  { %v2173_v19 = vpop.eup %2172 }
 0xb9f   :  { %v1096_v15 = vpop.permute.xlu1 %1095 }
 0xba0   :  { %v1098_v13 = vmul.f32 %v2169_v10, %v1096_v15 }
 0xba2   :  { %v1178_v12 = vpack.c.bf16 %v1098_v13, %v1098_v13 }
 0xba4   :  { %1994 = vmatmul.mubr.msk.bf16.vlgmr.msra.gmra.mrb[36].mxu0 %vm290_vm1, %v1178_v12 }
 0xba5   :  { %1305 = vmatpush1.bf16.msra.mxu0 %v2403_v29  ;;  %1336 = vmatprep.mubr.bf16.mxu0 %v2282_v1 }
 0xba6   :  { %1306 = vmatprep.subr.bf16.mxu0 %v2424_v33  ;;  %v2780_v33 = vld [vmem:[%s3047_s5] ss:$8 sps:$4 sm:$0xff]  }
 0xba9   :  { %1307 = vmatpush1.bf16.msra.mxu0 %v2435_v35  ;;  %v2787_v35 = vld [vmem:[%s3047_s5 + $0x14] ss:$8 sps:$4 sm:$0xff]  }
 0xbaa   :  { %1308 = vmatprep.subr.bf16.mxu0 %v2449_v37  ;;  %v2796_v37 = vld [vmem:[%s3047_s5 + $0x10] ss:$8 sps:$4 sm:$0xff]  }
 0xbad   :  { %1309 = vmatpush1.bf16.msra.mxu0 %v2454_v38  ;;  %v1174_v22 = vpop.permute.xlu0 %1173  ;;  %v2803_v38 = vld [vmem:[%s3047_s5 + $0x24] ss:$8 sps:$4 sm:$0xff]  }
 0xbae   :  { %1310 = vmatprep.subr.bf16.mxu0 %v2477_v42  ;;  %v1176_v21 = vmul.f32 %v2173_v19, %v1174_v22  ;;  %v2817_v42 = vld [vmem:[%s3047_s5 + $0x34] ss:$8 sps:$4 sm:$0xff]  }
 0xbb0   :  { %v1177_v29 = vpack.c.bf16 %v1176_v21, %v1176_v21 }
 0xbb1   :  { %1311 = vmatpush1.bf16.msra.mxu0 %v2482_v43  ;;  %v2826_v43 = vld [vmem:[%s3048_s2 + $0x4] ss:$8 sps:$4 sm:$0xff]  }
 0xbb2   :  { %1426 = vmatprep.subr.bf16.mxu0 %v2467_v40  ;;  %1995 = vmatmul.mubr.msk.bf16.vlgmr.msra.gmra.mrb[28].mxu1 %vm290_vm1, %v1177_v29  ;;  %v2810_v40 = vld [vmem:[%s3047_s5 + $0x20] ss:$8 sps:$4 sm:$0xff]  }
 0xbb3   :  { %1383 = vmatpush1.bf16.msra.mxu1 %v2780_v33  ;;  %1414 = vmatprep.mubr.bf16.mxu1 %v2282_v1 }
 0xbb4   :  { %1998 = vmatmul.mubr.msk.bf16.vlgmr.msra.gmra.mrb[40].mxu0 %vm290_vm1, %v1177_v29  ;;  %1384 = vmatprep.subr.bf16.mxu1 %v2787_v35 }
 0xbb5   :  { %1427 = vmatpush1.bf16.msra.mxu0 %v2488_v44  ;;  %1458 = vmatprep.mubr.bf16.mxu0 %v2282_v1  ;;  %v2832_v44 = vld [vmem:[%s3047_s5 + $0x4] ss:$8 sps:$4 sm:$0xff]  }
 0xbb6   :  { %1428 = vmatprep.subr.bf16.mxu0 %v2494_v45 }
 0xbb7   :  { %1385 = vmatpush1.bf16.msra.mxu1 %v2796_v37 }
 0xbb8   :  { %1386 = vmatprep.subr.bf16.mxu1 %v2803_v38 }
 0xbb9   :  { %1429 = vmatpush1.bf16.msra.mxu0 %v2504_v46 }
 0xbba   :  { %1430 = vmatprep.subr.bf16.mxu0 %v2511_v47 }
 0xbbb   :  { %1387 = vmatpush1.bf16.msra.mxu1 %v2810_v40 }
 0xbbc   :  { %1388 = vmatprep.subr.bf16.mxu1 %v2817_v42 }
 0xbbd   :  { %1431 = vmatpush1.bf16.msra.mxu0 %v2519_v48  ;;  %v159_v48 = vadd.f32 %v2553_v62, %v2369_v16 }
 0xbbe   :  { %1432 = vmatprep.subr.bf16.mxu0 %v2526_v50  ;;  %v161_v50 = vadd.f32 %v2555_v0, %v2355_v8 }
 0xbbf   :  { %1389 = vmatpush1.bf16.msra.mxu1 %v2460_v39 }
 0xbc0   :  { %1504 = vmatprep.subr.bf16.mxu1 %v2826_v43 }
 0xbc1   :  { %1433 = vmatpush1.bf16.msra.mxu0 %v2531_v52 }
 0xbc2   :  { %1582 = vmatprep.subr.bf16.mxu0 %v2832_v44 }
 0xc77   :  { %v1216_v45 = vpop.f32.mrb[36].mxu0 }
 0xc78   :  { %v1218_v46 = vpop.f32.mrb[37].mxu0 }
 0xc79   :  { %v1220_v47 = vpop.f32.mrb[38].mxu0 }
 0xc7a   :  { %v1221_v39 = vpop.f32.mrb[39].mxu0 }
 0xc85   :  { %v1260_v52 = vpop.f32.mrb[28].mxu1 }
 0xc86   :  { %v1261_v58 = vadd.f32 %v1260_v52, %v1216_v45  ;;  %v1262_v5 = vpop.f32.mrb[29].mxu1 }
 0xc87   :  { %v1338_v51 = vpop.f32.mrb[40].mxu0  ;;  %v1263_v60 = vadd.f32 %v1262_v5, %v1218_v46  ;;  %v1264_v63 = vpop.f32.mrb[30].mxu1  ;;  %v2863_v5 = vld [vmem:[%s3048_s2] ss:$8 sps:$4 sm:$0xff]  }
 0xc88   :  { %v1345_v59 = vadd.f32 %v1338_v51, %v159_v48  ;;  %v1340_v24 = vpop.f32.mrb[41].mxu0  ;;  %v1265_v7 = vpop.f32.mrb[31].mxu1  ;;  %v1267_v32 = vadd.f32 %v1261_v58, %v2601_v6  ;;  %v2892_v63 = vld [vmem:[%s3048_s2 + $0x20] ss:$8 sps:$4 sm:$0xff]  }
 0xc89   :  { %v1346_v18 = vadd.f32 %v1340_v24, %v161_v50  ;;  %v1342_v61 = vpop.f32.mrb[42].mxu0  ;;  %v1268_v53 = vadd.f32 %v1263_v60, %v2594_v49  ;;  %v2878_v24 = vld [vmem:[%s3048_s2 + $0x10] ss:$8 sps:$4 sm:$0xff]   ;;  %v2884_v60 = vld [vmem:[%s3048_s2 + $0x24] ss:$8 sps:$4 sm:$0xff]  }
 0xc8a   :  { %v1343_v23 = vpop.f32.mrb[43].mxu0  ;;  %v1999_v41 = vmul.f32 -1.442695, %v1345_v59  ;;  %v1996_v20 = vmul.f32 -1.442695, %v1267_v32 }
 0xc8b   :  { %2174 = vtanh.f32 %v1346_v18  ;;  %v2000_v22 = vmul.f32 -1.442695, %v1346_v18  ;;  %v2870_v59 = vld [vmem:[%s3048_s2 + $0x14] ss:$8 sps:$4 sm:$0xff]   ;;  %v2904_v61 = vld [vmem:[%s3047_s5 + $0x30] ss:$8 sps:$4 sm:$0xff]  }
 0xc8c   :  { %2176 = vtanh.f32 %v1268_v53  ;;  %v2898_v18 = vld [vmem:[%s3048_s2 + $0x34] ss:$8 sps:$4 sm:$0xff]   ;;  %v2911_v7 = vld [vmem:[%s3048_s2 + $0x30] ss:$8 sps:$4 sm:$0xff]   ;;  %v2917_v23 = vld [vmem:[%s3049_s4 + $0x4] ss:$8 sps:$4 sm:$0xff]  }
 0xc8d   :  { %2178 = vpow2.f32 %v1999_v41  ;;  %v2949_v32 = vld [vmem:[%s3049_s4 + $0x20] ss:$8 sps:$4 sm:$0xff]   ;;  %v2955_v41 = vld [vmem:[%s3049_s4 + $0x34] ss:$8 sps:$4 sm:$0xff]  }
 0xc8e   :  { %2180 = vpow2.f32 %v1996_v20  ;;  %v2961_v20 = vld [vmem:[%s3049_s4 + $0x30] ss:$8 sps:$4 sm:$0xff]  }
 0xc95   :  { %v2175_v62 = vpop.eup %2174 }
 0xc96   :  { %1362 = vrot.lane.b32.xlu0 %v2175_v62, %s2283_s1  ;;  %v2177_v0 = vpop.eup %2176  ;;  %v2937_v62 = vld [vmem:[%s3049_s4 + $0x10] ss:$8 sps:$4 sm:$0xff]  }
 0xc97   :  { %1284 = vrot.lane.b32.xlu1 %v2177_v0, %s2283_s1  ;;  %v2179_v55 = vpop.eup %2178  ;;  %v2943_v0 = vld [vmem:[%s3049_s4 + $0x24] ss:$8 sps:$4 sm:$0xff]  }
 0xc98   :  { %v2181_v2 = vpop.eup %2180  ;;  %v1353_v26 = vadd.f32 1.0, %v2179_v55 }
 0xc99   :  { %v1275_v28 = vadd.f32 1.0, %v2181_v2 }
 0xc9a   :  { %2182 = vrcp.f32 %v1353_v26 }
 0xc9b   :  { %2184 = vrcp.f32 %v1275_v28 }
 0xca4   :  { %v2183_v30 = vpop.eup %2182 }
 0xca5   :  { %v2185_v54 = vpop.eup %2184  ;;  %v1360_v14 = vmul.f32 %v2183_v30, %v2761_v34  ;;  %v1997_v34 = vmul.f32 -1.442695, %v1268_v53  ;;  %v2931_v53 = vld [vmem:[%s3049_s4 + $0x14] ss:$8 sps:$4 sm:$0xff]  }
 0xca6   :  { %v1282_v25 = vmul.f32 %v2185_v54, %v2756_v27 }
 0xd08   :  { %v1363_v31 = vpop.permute.xlu0 %1362 }
 0xd09   :  { %v1365_v36 = vmul.f32 %v2183_v30, %v1363_v31  ;;  %v1285_v57 = vpop.permute.xlu1 %1284 }
 0xd0a   :  { %v1287_v3 = vmul.f32 %v2185_v54, %v1285_v57 }
 0xd0b   :  { %1367 = vrot.lane.b32.xlu0 %v1365_v36, %s2283_s1 }
 0xd0c   :  { %1289 = vrot.lane.b32.xlu1 %v1287_v3, %s2283_s1 }
 0xd7d   :  { %v1368_v10 = vpop.permute.xlu0 %1367 }
 0xd7e   :  { %v2846_v15 = vadd.f32 %v1368_v10, %v1360_v14  ;;  %v1290_v13 = vpop.permute.xlu1 %1289  ;;  %v165_v10 = vadd.f32 %v2557_v4, %v2369_v16 }
 0xd7f   :  { %v2850_v12 = vadd.f32 %v1290_v13, %v1282_v25 }
 0xd80   :  { %2186 = vtanh.f32 %v2846_v15 }
 0xd81   :  { %2188 = vtanh.f32 %v2850_v12 }
 0xd82   :  { %2190 = vpow2.f32 %v2000_v22 }
 0xd83   :  { %2192 = vpow2.f32 %v1997_v34 }
 0xd8a   :  { %v2187_v56 = vpop.eup %2186 }
 0xd8b   :  { %1373 = vrot.lane.b32.xlu0 %v2187_v56, %s2283_s1  ;;  %v2189_v19 = vpop.eup %2188 }
 0xd8c   :  { %1295 = vrot.lane.b32.xlu1 %v2189_v19, %s2283_s1  ;;  %v2191_v21 = vpop.eup %2190 }
 0xd8d   :  { %v2193_v29 = vpop.eup %2192  ;;  %v1354_v27 = vadd.f32 1.0, %v2191_v21 }
 0xd8e   :  { %v1276_v45 = vadd.f32 1.0, %v2193_v29 }
 0xd8f   :  { %2194 = vrcp.f32 %v1354_v27 }
 0xd90   :  { %2196 = vrcp.f32 %v1276_v45 }
 0xd99   :  { %v2195_v46 = vpop.eup %2194 }
 0xd9a   :  { %v2197_v48 = vpop.eup %2196 }
 0xdfd   :  { %v1374_v47 = vpop.permute.xlu0 %1373 }
 0xdfe   :  { %v1376_v39 = vmul.f32 %v2195_v46, %v1374_v47  ;;  %v1296_v50 = vpop.permute.xlu1 %1295 }
 0xdff   :  { %v1298_v51 = vmul.f32 %v2197_v48, %v1296_v50 }
 0xe00   :  { %v1377_v52 = vpack.c.bf16 %v1376_v39, %v1376_v39 }
 0xe01   :  { %v1378_v58 = vpack.c.bf16 %v1298_v51, %v1298_v51 }
 0xe02   :  { %2002 = vmatmul.mubr.msk.bf16.vlgmr.msra.gmra.mrb[44].mxu0 %vm290_vm1, %v1377_v52 }
 0xe03   :  { %1583 = vmatpush1.bf16.msra.mxu0 %v2780_v33  ;;  %1614 = vmatprep.mubr.bf16.mxu0 %v2282_v1 }
 0xe04   :  { %2001 = vmatmul.mubr.msk.bf16.vlgmr.msra.gmra.mrb[32].mxu1 %vm290_vm1, %v1378_v58  ;;  %1584 = vmatprep.subr.bf16.mxu0 %v2787_v35 }
 0xe05   :  { %1505 = vmatpush1.bf16.msra.mxu1 %v2863_v5  ;;  %1536 = vmatprep.mubr.bf16.mxu1 %v2282_v1 }
 0xe06   :  { %1506 = vmatprep.subr.bf16.mxu1 %v2870_v59 }
 0xe07   :  { %1585 = vmatpush1.bf16.msra.mxu0 %v2796_v37 }
 0xe08   :  { %1586 = vmatprep.subr.bf16.mxu0 %v2803_v38 }
 0xe09   :  { %1507 = vmatpush1.bf16.msra.mxu1 %v2878_v24 }
 0xe0a   :  { %1508 = vmatprep.subr.bf16.mxu1 %v2884_v60 }
 0xe0b   :  { %1587 = vmatpush1.bf16.msra.mxu0 %v2810_v40 }
 0xe0c   :  { %1588 = vmatprep.subr.bf16.mxu0 %v2817_v42 }
 0xe0d   :  { %1509 = vmatpush1.bf16.msra.mxu1 %v2892_v63 }
 0xe0e   :  { %1510 = vmatprep.subr.bf16.mxu1 %v2898_v18 }
 0xe0f   :  { %1589 = vmatpush1.bf16.msra.mxu0 %v2904_v61 }
 0xe10   :  { %1704 = vmatprep.subr.bf16.mxu0 %v2826_v43  ;;  %v2924_v43 = vld [vmem:[%s3049_s4] ss:$8 sps:$4 sm:$0xff]  }
 0xe11   :  { %1511 = vmatpush1.bf16.msra.mxu1 %v2911_v7 }
 0xe12   :  { %1626 = vmatprep.subr.bf16.mxu1 %v2917_v23 }
 0xe14   :  { %2005 = vmatmul.mubr.msk.bf16.vlgmr.msra.gmra.mrb[36].mxu1 %vm290_vm1, %v1377_v52 }
 0xe15   :  { %1627 = vmatpush1.bf16.msra.mxu1 %v2924_v43  ;;  %1658 = vmatprep.mubr.bf16.mxu1 %v2282_v1 }
 0xe16   :  { %1628 = vmatprep.subr.bf16.mxu1 %v2931_v53 }
 0xe19   :  { %1629 = vmatpush1.bf16.msra.mxu1 %v2937_v62 }
 0xe1a   :  { %1630 = vmatprep.subr.bf16.mxu1 %v2943_v0 }
 0xe1d   :  { %1631 = vmatpush1.bf16.msra.mxu1 %v2949_v32 }
 0xe1e   :  { %1632 = vmatprep.subr.bf16.mxu1 %v2955_v41 }
 0xe21   :  { %1633 = vmatpush1.bf16.msra.mxu1 %v2961_v20 }
 0xe22   :  { %1782 = vmatprep.subr.bf16.mxu1 %v2832_v44  ;;  %v167_v44 = vadd.f32 %v2559_v9, %v2355_v8 }
 0xed5   :  { %v1460_v55 = vpop.f32.mrb[44].mxu0 }
 0xed6   :  { %v1462_v2 = vpop.f32.mrb[45].mxu0 }
 0xed7   :  { %v1416_v26 = vpop.f32.mrb[32].mxu1  ;;  %v1464_v28 = vpop.f32.mrb[46].mxu0 }
 0xed8   :  { %v1461_v30 = vadd.f32 %v1460_v55, %v1416_v26  ;;  %v1418_v31 = vpop.f32.mrb[33].mxu1  ;;  %v1465_v36 = vpop.f32.mrb[47].mxu0 }
 0xed9   :  { %v1463_v54 = vadd.f32 %v1462_v2, %v1418_v31  ;;  %v1420_v57 = vpop.f32.mrb[34].mxu1 }
 0xeda   :  { %v1421_v3 = vpop.f32.mrb[35].mxu1  ;;  %v1467_v27 = vadd.f32 %v1461_v30, %v2601_v6 }
 0xedb   :  { %v1468_v14 = vadd.f32 %v1463_v54, %v2594_v49 }
 0xedc   :  { %v2003_v45 = vmul.f32 -1.442695, %v1467_v27 }
 0xedd   :  { %2198 = vtanh.f32 %v1468_v14  ;;  %v2004_v3 = vmul.f32 -1.442695, %v1468_v14 }
 0xee7   :  { %v2199_v25 = vpop.eup %2198  ;;  %v1538_v13 = vpop.f32.mrb[36].mxu1 }
 0xee8   :  { %v1545_v56 = vadd.f32 %v1538_v13, %v165_v10  ;;  %v1540_v19 = vpop.f32.mrb[37].mxu1  ;;  %1484 = vrot.lane.b32.xlu1 %v2199_v25, %s2283_s1 }
 0xee9   :  { %v1546_v22 = vadd.f32 %v1540_v19, %v167_v44  ;;  %v1542_v34 = vpop.f32.mrb[38].mxu1 }
 0xeea   :  { %v1543_v21 = vpop.f32.mrb[39].mxu1  ;;  %v2006_v47 = vmul.f32 -1.442695, %v1545_v56 }
 0xeeb   :  { %2200 = vtanh.f32 %v1546_v22  ;;  %v2007_v25 = vmul.f32 -1.442695, %v1546_v22 }
 0xeec   :  { %2202 = vpow2.f32 %v2003_v45 }
 0xef5   :  { %v2201_v29 = vpop.eup %2200 }
 0xef6   :  { %1562 = vrot.lane.b32.xlu0 %v2201_v29, %s2283_s1  ;;  %v2203_v4 = vpop.eup %2202 }
 0xef7   :  { %v1475_v46 = vadd.f32 1.0, %v2203_v4 }
 0xef9   :  { %2204 = vrcp.f32 %v1475_v46 }
 0xefa   :  { %2206 = vpow2.f32 %v2006_v47 }
 0xf03   :  { %v2205_v9 = vpop.eup %2204 }
 0xf04   :  { %v2207_v48 = vpop.eup %2206  ;;  %v1482_v2 = vmul.f32 %v2205_v9, %v2850_v12 }
 0xf05   :  { %v1553_v52 = vadd.f32 1.0, %v2207_v48 }
 0xf07   :  { %2208 = vrcp.f32 %v1553_v52 }
 0xf11   :  { %v2209_v51 = vpop.eup %2208 }
 0xf12   :  { %v1560_v31 = vmul.f32 %v2209_v51, %v2846_v15 }
 0xf5a   :  { %v1485_v39 = vpop.permute.xlu1 %1484 }
 0xf5b   :  { %v1487_v50 = vmul.f32 %v2205_v9, %v1485_v39 }
 0xf5d   :  { %1489 = vrot.lane.b32.xlu1 %v1487_v50, %s2283_s1 }
 0xf68   :  { %v1563_v58 = vpop.permute.xlu0 %1562 }
 0xf69   :  { %v1565_v55 = vmul.f32 %v2209_v51, %v1563_v58 }
 0xf6b   :  { %1567 = vrot.lane.b32.xlu0 %v1565_v55, %s2283_s1 }
 0xfcf   :  { %v1490_v26 = vpop.permute.xlu1 %1489 }
 0xfd0   :  { %v2976_v28 = vadd.f32 %v1490_v26, %v1482_v2 }
 0xfd2   :  { %2210 = vtanh.f32 %v2976_v28 }
 0xfdc   :  { %v2211_v30 = vpop.eup %2210 }
 0xfdd   :  { %1495 = vrot.lane.b32.xlu1 %v2211_v30, %s2283_s1  ;;  %v1568_v36 = vpop.permute.xlu0 %1567 }
 0xfde   :  { %v2981_v54 = vadd.f32 %v1568_v36, %v1560_v31 }
 0xfe0   :  { %2212 = vtanh.f32 %v2981_v54 }
 0xfe1   :  { %2214 = vpow2.f32 %v2004_v3 }
 0xfea   :  { %v2213_v57 = vpop.eup %2212 }
 0xfeb   :  { %1573 = vrot.lane.b32.xlu0 %v2213_v57, %s2283_s1  ;;  %v2215_v12 = vpop.eup %2214 }
 0xfec   :  { %v1476_v10 = vadd.f32 1.0, %v2215_v12 }
 0xfee   :  { %2216 = vrcp.f32 %v1476_v10 }
 0xfef   :  { %2218 = vpow2.f32 %v2007_v25 }
 0xff8   :  { %v2217_v44 = vpop.eup %2216 }
 0xff9   :  { %v2219_v56 = vpop.eup %2218 }
 0xffa   :  { %v1554_v34 = vadd.f32 1.0, %v2219_v56 }
 0xffc   :  { %2220 = vrcp.f32 %v1554_v34 }
0x1006   :  { %v2221_v14 = vpop.eup %2220 }
0x104f   :  { %v1496_v13 = vpop.permute.xlu1 %1495 }
0x1050   :  { %v1498_v19 = vmul.f32 %v2217_v44, %v1496_v13 }
0x1052   :  { %v1578_v15 = vpack.c.bf16 %v1498_v19, %v1498_v19 }
0x1054   :  { %2008 = vmatmul.mubr.msk.bf16.vlgmr.msra.gmra.mrb[48].mxu0 %vm290_vm1, %v1578_v15 }
0x1055   :  { %1705 = vmatpush1.bf16.msra.mxu0 %v2863_v5  ;;  %1736 = vmatprep.mubr.bf16.mxu0 %v2282_v1 }
0x1056   :  { %1706 = vmatprep.subr.bf16.mxu0 %v2870_v59 }
0x1059   :  { %1707 = vmatpush1.bf16.msra.mxu0 %v2878_v24 }
0x105a   :  { %1708 = vmatprep.subr.bf16.mxu0 %v2884_v60 }
0x105d   :  { %1709 = vmatpush1.bf16.msra.mxu0 %v2892_v63  ;;  %v1574_v22 = vpop.permute.xlu0 %1573 }
0x105e   :  { %1710 = vmatprep.subr.bf16.mxu0 %v2898_v18  ;;  %v1576_v21 = vmul.f32 %v2221_v14, %v1574_v22 }
0x1060   :  { %v1577_v5 = vpack.c.bf16 %v1576_v21, %v1576_v21 }
0x1061   :  { %1711 = vmatpush1.bf16.msra.mxu0 %v2911_v7 }
0x1062   :  { %1826 = vmatprep.subr.bf16.mxu0 %v2917_v23  ;;  %2009 = vmatmul.mubr.msk.bf16.vlgmr.msra.gmra.mrb[40].mxu1 %vm290_vm1, %v1577_v5 }
0x1063   :  { %1783 = vmatpush1.bf16.msra.mxu1 %v2780_v33  ;;  %1814 = vmatprep.mubr.bf16.mxu1 %v2282_v1 }
0x1064   :  { %2012 = vmatmul.mubr.msk.bf16.vlgmr.msra.gmra.mrb[52].mxu0 %vm290_vm1, %v1577_v5  ;;  %1784 = vmatprep.subr.bf16.mxu1 %v2787_v35 }
0x1065   :  { %1827 = vmatpush1.bf16.msra.mxu0 %v2924_v43  ;;  %1858 = vmatprep.mubr.bf16.mxu0 %v2282_v1 }
0x1066   :  { %1828 = vmatprep.subr.bf16.mxu0 %v2931_v53 }
0x1067   :  { %1785 = vmatpush1.bf16.msra.mxu1 %v2796_v37 }
0x1068   :  { %1786 = vmatprep.subr.bf16.mxu1 %v2803_v38  ;;  %v169_v38 = vadd.f32 %v2561_v11, %v2369_v16 }
0x1069   :  { %1829 = vmatpush1.bf16.msra.mxu0 %v2937_v62 }
0x106a   :  { %1830 = vmatprep.subr.bf16.mxu0 %v2943_v0 }
0x106b   :  { %1787 = vmatpush1.bf16.msra.mxu1 %v2810_v40  ;;  %v171_v40 = vadd.f32 %v2563_v17, %v2355_v8 }
0x106c   :  { %1788 = vmatprep.subr.bf16.mxu1 %v2817_v42 }
0x106d   :  { %1831 = vmatpush1.bf16.msra.mxu0 %v2949_v32 }
0x106e   :  { %1832 = vmatprep.subr.bf16.mxu0 %v2955_v41 }
0x106f   :  { %1789 = vmatpush1.bf16.msra.mxu1 %v2904_v61 }
0x1071   :  { %1833 = vmatpush1.bf16.msra.mxu0 %v2961_v20 }
0x1127   :  { %v1616_v1 = vpop.f32.mrb[48].mxu0 }
0x1128   :  { %v1618_v33 = vpop.f32.mrb[49].mxu0 }
0x1129   :  { %v1620_v35 = vpop.f32.mrb[50].mxu0 }
0x112a   :  { %v1621_v37 = vpop.f32.mrb[51].mxu0 }
0x1135   :  { %v1660_v59 = vpop.f32.mrb[40].mxu1 }
0x1136   :  { %v1661_v60 = vadd.f32 %v1660_v59, %v1616_v1  ;;  %v1662_v42 = vpop.f32.mrb[41].mxu1 }
0x1137   :  { %v1738_v24 = vpop.f32.mrb[52].mxu0  ;;  %v1663_v7 = vadd.f32 %v1662_v42, %v1618_v33  ;;  %v1664_v61 = vpop.f32.mrb[42].mxu1 }
0x1138   :  { %v1745_v63 = vadd.f32 %v1738_v24, %v169_v38  ;;  %v1740_v18 = vpop.f32.mrb[53].mxu0  ;;  %v1665_v53 = vpop.f32.mrb[43].mxu1  ;;  %v1667_v11 = vadd.f32 %v1661_v60, %v2601_v6 }
0x1139   :  { %v1746_v23 = vadd.f32 %v1740_v18, %v171_v40  ;;  %v1742_v43 = vpop.f32.mrb[54].mxu0  ;;  %v1668_v0 = vadd.f32 %v1663_v7, %v2594_v49 }
0x113a   :  { %v1743_v62 = vpop.f32.mrb[55].mxu0  ;;  %v2013_v17 = vmul.f32 -1.442695, %v1745_v63  ;;  %v2010_v32 = vmul.f32 -1.442695, %v1667_v11 }
0x113b   :  { %2222 = vtanh.f32 %v1746_v23  ;;  %v2014_v30 = vmul.f32 -1.442695, %v1746_v23  ;;  %v2011_v31 = vmul.f32 -1.442695, %v1668_v0  ;;  %v2019_v11 = vld [vmem:[%s3052_s7] ss:$0 sm:$0xff] }
0x113c   :  { %2224 = vtanh.f32 %v1668_v0 }
0x113d   :  { %2226 = vpow2.f32 %v2013_v17 }
0x113e   :  { %2228 = vpow2.f32 %v2010_v32 }
0x1145   :  { %v2223_v16 = vpop.eup %2222 }
0x1146   :  { %1762 = vrot.lane.b32.xlu0 %v2223_v16, %s2283_s1  ;;  %v2225_v8 = vpop.eup %2224 }
0x1147   :  { %1684 = vrot.lane.b32.xlu1 %v2225_v8, %s2283_s1  ;;  %v2227_v41 = vpop.eup %2226 }
0x1148   :  { %v2229_v20 = vpop.eup %2228  ;;  %v1753_v29 = vadd.f32 1.0, %v2227_v41 }
0x1149   :  { %v1675_v27 = vadd.f32 1.0, %v2229_v20 }
0x114a   :  { %2230 = vrcp.f32 %v1753_v29 }
0x114b   :  { %2232 = vrcp.f32 %v1675_v27 }
0x1154   :  { %v2231_v45 = vpop.eup %2230 }
0x1155   :  { %v2233_v47 = vpop.eup %2232  ;;  %v1760_v48 = vmul.f32 %v2231_v45, %v2981_v54 }
0x1156   :  { %v1682_v51 = vmul.f32 %v2233_v47, %v2976_v28 }
0x11b8   :  { %v1763_v4 = vpop.permute.xlu0 %1762 }
0x11b9   :  { %v1765_v46 = vmul.f32 %v2231_v45, %v1763_v4  ;;  %v1685_v9 = vpop.permute.xlu1 %1684 }
0x11ba   :  { %v1687_v39 = vmul.f32 %v2233_v47, %v1685_v9 }
0x11bb   :  { %1767 = vrot.lane.b32.xlu0 %v1765_v46, %s2283_s1 }
0x11bc   :  { %1689 = vrot.lane.b32.xlu1 %v1687_v39, %s2283_s1 }
0x122d   :  { %v1768_v50 = vpop.permute.xlu0 %1767 }
0x122e   :  { %v1770_v52 = vadd.f32 %v1768_v50, %v1760_v48  ;;  %v1690_v58 = vpop.permute.xlu1 %1689 }
0x122f   :  { %v1692_v55 = vadd.f32 %v1690_v58, %v1682_v51 }
0x1230   :  { %2234 = vtanh.f32 %v1770_v52 }
0x1231   :  { %2236 = vtanh.f32 %v1692_v55 }
0x1232   :  { %2238 = vpow2.f32 %v2014_v30 }
0x1233   :  { %2240 = vpow2.f32 %v2011_v31 }
0x123a   :  { %v2235_v2 = vpop.eup %2234 }
0x123b   :  { %1773 = vrot.lane.b32.xlu0 %v2235_v2, %s2283_s1  ;;  %v2237_v26 = vpop.eup %2236 }
0x123c   :  { %1695 = vrot.lane.b32.xlu1 %v2237_v26, %s2283_s1  ;;  %v2239_v36 = vpop.eup %2238 }
0x123d   :  { %v2241_v54 = vpop.eup %2240  ;;  %v1754_v57 = vadd.f32 1.0, %v2239_v36 }
0x123e   :  { %v1676_v3 = vadd.f32 1.0, %v2241_v54 }
0x123f   :  { %2242 = vrcp.f32 %v1754_v57 }
0x1240   :  { %2244 = vrcp.f32 %v1676_v3 }
0x1249   :  { %v2243_v28 = vpop.eup %2242 }
0x124a   :  { %v2245_v25 = vpop.eup %2244 }
0x12ad   :  { %v1774_v12 = vpop.permute.xlu0 %1773 }
0x12ae   :  { %v1776_v10 = vmul.f32 %v2243_v28, %v1774_v12  ;;  %v1696_v44 = vpop.permute.xlu1 %1695 }
0x12af   :  { %v1698_v56 = vmul.f32 %v2245_v25, %v1696_v44 }
0x12b0   :  { %v1777_v13 = vpack.c.bf16 %v1776_v10, %v1776_v10 }
0x12b1   :  { %v1778_v19 = vpack.c.bf16 %v1698_v56, %v1698_v56 }
0x12b2   :  { %2016 = vmatmul.mubr.msk.bf16.vlgmr.msra.gmra.mrb[56].mxu0 %vm290_vm1, %v1777_v13 }
0x12b3   :  { %2015 = vmatmul.mubr.msk.bf16.vlgmr.msra.gmra.mrb[44].mxu1 %vm290_vm1, %v1778_v19 }
0x1385   :  { %v1860_v15 = vpop.f32.mrb[56].mxu0 }
0x1386   :  { %v1862_v34 = vpop.f32.mrb[57].mxu0  ;;  %v1816_v14 = vpop.f32.mrb[44].mxu1 }
0x1387   :  { %v1864_v22 = vpop.f32.mrb[58].mxu0  ;;  %v1861_v21 = vadd.f32 %v1860_v15, %v1816_v14  ;;  %v1818_v5 = vpop.f32.mrb[45].mxu1 }
0x1388   :  { %v1865_v1 = vpop.f32.mrb[59].mxu0  ;;  %v1863_v33 = vadd.f32 %v1862_v34, %v1818_v5  ;;  %v1820_v35 = vpop.f32.mrb[46].mxu1 }
0x1389   :  { %v1821_v37 = vpop.f32.mrb[47].mxu1  ;;  %v1867_v59 = vadd.f32 %v1861_v21, %v2601_v6 }
0x138a   :  { %v1868_v38 = vadd.f32 %v1863_v33, %v2594_v49  ;;  %v14_v49 = vstv %s3051_s8 }
0x138b   :  { %v2017_v24 = vmul.f32 -1.442695, %v1867_v59  ;;  %15 = vst [vmem:[#allocation3] sm:$0x1] %v14_v49 }
0x138c   :  { %2246 = vtanh.f32 %v1868_v38  ;;  %v2018_v53 = vmul.f32 -1.442695, %v1868_v38 }
0x138d   :  { %2248 = vpow2.f32 %v2017_v24 }
0x1392   :  { %v2020_v20 = vld [vmem:[#allocation3] ss:$0 sm:$0xff] }
0x1396   :  { %v2247_v40 = vpop.eup %2246 }
0x1397   :  { %1884 = vrot.lane.b32.xlu1 %v2247_v40, %s2283_s1  ;;  %v2249_v60 = vpop.eup %2248 }
0x1398   :  { %v1875_v42 = vadd.f32 1.0, %v2249_v60 }
0x139a   :  { %2250 = vrcp.f32 %v1875_v42 }
0x13a4   :  { %v2251_v63 = vpop.eup %2250 }
0x13a5   :  { %v1882_v61 = vmul.f32 %v2251_v63, %v1692_v55 }
0x1409   :  { %v1885_v18 = vpop.permute.xlu1 %1884 }
0x140a   :  { %v1887_v7 = vmul.f32 %v2251_v63, %v1885_v18 }
0x140c   :  { %1889 = vrot.lane.b32.xlu0 %v1887_v7, %s2283_s1 }
0x147e   :  { %v1890_v23 = vpop.permute.xlu0 %1889 }
0x147f   :  { %v1892_v43 = vadd.f32 %v1890_v23, %v1882_v61 }
0x1481   :  { %2252 = vtanh.f32 %v1892_v43 }
0x1482   :  { %2254 = vpow2.f32 %v2018_v53 }
0x148b   :  { %v2253_v6 = vpop.eup %2252 }
0x148c   :  { %1895 = vrot.lane.b32.xlu1 %v2253_v6, %s2283_s1  ;;  %v2255_v62 = vpop.eup %2254 }
0x148d   :  { %v1876_v0 = vadd.f32 1.0, %v2255_v62 }
0x148f   :  { %2256 = vrcp.f32 %v1876_v0 }
0x1499   :  { %v2257_v16 = vpop.eup %2256 }
0x14fe   :  { %v1896_v8 = vpop.permute.xlu1 %1895 }
0x14ff   :  { %v1898_v17 = vmul.f32 %v2257_v16, %v1896_v8 }
0x1501   :  { %v1906_v32 = vmul.f32 %v2019_v11, %v1898_v17 }
0x1503   :  { %v1907_v41 = vsel %vm290_vm1, %v1906_v32, 0.0 }
0x1504   :  { %1908 = vadd.xlane.f32.xlu0 %v1907_v41 }
0x1591   :  { %v1909_v29 = vpop.xlane.xlu0 %1908 }
0x1592   :  { %v1917_v27 = vadd.f32 %v2020_v20, %v1909_v29 }
0x1594   :  { %1919 = vst.msk [vmem:[%s3053_s9] sm:$0xff] %vm1918_vm2, %v1917_v27 }

</bundles_post_ra>
